<compile_context>
chip_gen: v7x
topology: tpu7x:2x2x1
jax: 0.10.0
libtpu: 0.0.40
codegen_flags: <defaults>
</compile_context>

<pallas_src>
import functools

import jax
import jax.numpy as jnp
from jax.experimental import pallas as pl
from jax.experimental.pallas import tpu as pltpu


def _round_up(x, m):
    return (x + m - 1) // m * m


# ----------------------------------------------------------------------------
# Pallas kernel: one (batch, output-row-tile) per grid step.
# ----------------------------------------------------------------------------
def _conv_dw_kernel(x_ref, dww_ref, dwb_ref, pww_ref, pwb_ref, out_ref,
                    dw_ref, *, stride, th, wo, rc):
    # x_ref:   (s*s, rph, wph, Cp) bf16  phase-decomposed padded input row tile
    # dww_ref: (9, Cp)  f32   depthwise 3x3 weights, tap-major, BN1 scale folded
    # dwb_ref: (1, Cp)  f32   folded BN1 bias
    # pww_ref: (Cp, Op) bf16  pointwise 1x1 weights, BN2 scale folded
    # pwb_ref: (1, Op)  f32   folded BN2 bias
    # out_ref: (1, th*wo, Op) bf16  flattened, lane-dense output tile
    # dw_ref:  (th*wo, Cp) bf16 VMEM scratch (depthwise result -> MXU operand)
    s = stride
    cp = x_ref.shape[-1]

    # Group the 9 taps by (stride phase, column offset) so each sublane-shifted
    # view of the plane is loaded once and reused across the row offsets.
    groups = {}
    for ki in range(3):
        for kj in range(3):
            phase = (ki % s) * s + (kj % s)
            ri, cj = ki // s, kj // s
            groups.setdefault((phase, cj), []).append((ri, 3 * ki + kj))

    # 3x3 depthwise conv, register-blocked over `rc` output rows: accumulate in
    # f32, bias-add, ReLU6 and cast to bf16 while the chunk is hot, then stage
    # the bf16 rows for the MXU.
    for c in range(th // rc):
        r0 = c * rc
        acc = jnp.zeros((rc, wo, cp), jnp.float32)
        for (phase, cj), taps in groups.items():
            rmax = max(ri for ri, _ in taps)
            blk = x_ref[phase, r0:r0 + rc + rmax, cj:cj + wo, :].astype(
                jnp.float32)
            for ri, widx in taps:
                acc = acc + blk[ri:ri + rc] * dww_ref[widx, :]
        dw = jnp.clip(acc + dwb_ref[0], 0.0, 6.0).astype(jnp.bfloat16)
        dw_ref[r0 * wo:(r0 + rc) * wo, :] = dw.reshape(rc * wo, cp)

    # 1x1 pointwise conv: one large-M bf16 MXU matmul with f32 accumulation.
    y = jnp.dot(dw_ref[...], pww_ref[...], preferred_element_type=jnp.float32)
    out_ref[0] = jnp.clip(y + pwb_ref[0], 0.0, 6.0).astype(out_ref.dtype)


# ----------------------------------------------------------------------------
# Wrapper helpers: BN folding, TF-SAME padding, VMEM-accurate tile picking.
# ----------------------------------------------------------------------------
def _fold_bn(gamma, beta, mean, var, eps=1e-5):
    scale = gamma / jnp.sqrt(var + eps)
    return scale, beta - mean * scale


def _tf_same_pad(size, stride, k=3):
    out = -(-size // stride)
    pad = max((out - 1) * stride + k - size, 0)
    return out, pad // 2, pad - pad // 2   # TF pads more on bottom/right


def _vmem_budget_bytes():
    """(vmem_limit_bytes, per-call tile budget), gated on the actual part."""
    try:
        cap = int(pltpu.get_tpu_info().vmem_capacity_bytes)
    except Exception:
        cap = 64 * 1024 * 1024              # conservative default (v7x-sized)
    limit = min(cap * 3 // 4, 96 * 1024 * 1024)   # ~48 MiB v7x, ~96 MiB v5e/v6e
    return limit, int(limit * 0.8)


def _tile_bytes(th, wo_t, cp, op, s, rc):
    """VMEM footprint: double-buffered operands + scratch + live f32 temps."""
    halo = 2 // s
    rph, wph = th + halo, wo_t + halo
    inp = 2 * s * s * rph * wph * cp * 2          # bf16 input tile  x2 buffers
    outp = 2 * th * wo_t * op * 2                 # bf16 output tile x2 buffers
    wts = 2 * (cp * op * 2 + 9 * cp * 4 + cp * 4 + op * 4)   # weights x2
    dw_scr = th * wo_t * cp * 2                   # bf16 depthwise scratch
    f32_tmp = th * wo_t * op * 4                  # matmul result pre-cast
    f32_tmp += (2 * rc + 2 * halo) * wph * cp * 4  # chunk acc + hoisted taps
    return inp + outp + wts + dw_scr + f32_tmp


def _pick_row_tile(ho, wo_t, cp, op, s, n, budget):
    """Largest row tile (multiple of 8) fitting the VMEM budget; keep >= 2
    parallel grid steps at batch 1 so both v7x TensorCores get work."""
    if ho <= 8:
        return ho
    th = _round_up(ho, 8)
    if n == 1:
        th = min(th, _round_up(-(-ho // 2), 8))
    while th > 8 and _tile_bytes(th, wo_t, cp, op, s, 8) > budget:
        th -= 8
    return th


# ----------------------------------------------------------------------------
# Forward wrapper.
# ----------------------------------------------------------------------------
def conv_dw_forward(x_nchw, params, stride):
    assert stride in (1, 2), "3x3 TF-SAME phase decomposition needs stride in {1,2}"
    N, C, H, W = x_nchw.shape
    dw_w, bn1, pw_w, bn2 = (params["dw_weight"], params["bn1"],
                            params["pw_weight"], params["bn2"])
    O = pw_w.shape[0]
    s = stride

    # Lane-dense channel padding (128 lanes).
    Cp = _round_up(C, 128)
    Op = _round_up(O, 128)

    # TF-SAME (Conv2d_tf) output size and top/left pad for the 3x3 conv.
    Ho, ph0, _ = _tf_same_pad(H, s)
    Wo, pw0, _ = _tf_same_pad(W, s)

    # Row tiling: blocks of `th` output rows, VMEM-accurate budget.
    vmem_limit, budget = _vmem_budget_bytes()
    Wo_t = _round_up(Wo, 8)
    th = _pick_row_tile(Ho, Wo_t, Cp, Op, s, N, budget)
    rc = 8 if th % 8 == 0 else th          # register-blocked depthwise chunk
    assert th % rc == 0
    R = -(-Ho // th)
    halo = 2 // s                          # extra rows/cols per stride phase
    rph, wph = th + halo, Wo_t + halo      # per-phase plane rows / cols
    M = (R - 1) * th + rph                 # total plane rows needed
    Hp, Wp = M * s, wph * s                # padded input extent

    # NCHW f32 -> NHWC bf16, TF-SAME zero pad (+ tiling padding), channel pad,
    # stride-phase decomposition and overlapping row windows (only the tiny
    # (3-s)-row halo is duplicated).  Under jit this prep fuses into a single
    # XLA pass that writes the bf16 kernel operand directly.
    x = jnp.transpose(x_nchw, (0, 2, 3, 1)).astype(jnp.bfloat16)
    xp = jnp.pad(x, ((0, 0), (ph0, Hp - H - ph0), (pw0, Wp - W - pw0),
                     (0, Cp - C)))
    #   x_tiles[((n*R+r)*s+pi)*s+pj, a, b, c] = xp[n, (r*th+a)*s+pi, b*s+pj, c]
    xm = xp.reshape(N, M, s, wph, s, Cp).transpose(0, 1, 2, 4, 3, 5)
    tiles = jnp.stack([xm[:, r * th:r * th + rph] for r in range(R)], axis=1)
    x_tiles = tiles.transpose(0, 1, 3, 4, 2, 5, 6).reshape(
        N * R * s * s, rph, wph, Cp)

    # Fold BN scales into the conv weights: kernel only does bias + ReLU6.
    dws, dwb = _fold_bn(*bn1)
    pws, pwb = _fold_bn(*bn2)
    dww = jnp.transpose(dw_w[:, 0], (1, 2, 0)).reshape(9, C) * dws[None, :]
    dww = jnp.pad(dww, ((0, 0), (0, Cp - C))).astype(jnp.float32)
    dwb = jnp.pad(dwb, (0, Cp - C)).reshape(1, Cp).astype(jnp.float32)
    pww = jnp.transpose(pw_w[:, :, 0, 0], (1, 0)) * pws[None, :]
    pww = jnp.pad(pww, ((0, Cp - C), (0, Op - O))).astype(jnp.bfloat16)
    pwb = jnp.pad(pwb, (0, Op - O)).reshape(1, Op).astype(jnp.float32)

    T = N * R
    kernel = functools.partial(_conv_dw_kernel, stride=s, th=th, wo=Wo_t, rc=rc)
    # NOTE: the four constant operands below could be single-buffered with
    # pipeline_mode=pl.Buffered(1); left at the default for portability and
    # charged to the VMEM budget instead.
    out = pl.pallas_call(
        kernel,
        out_shape=jax.ShapeDtypeStruct((T, th * Wo_t, Op), jnp.bfloat16),
        grid_spec=pltpu.PrefetchScalarGridSpec(
            num_scalar_prefetch=0,
            grid=(T,),
            in_specs=[
                pl.BlockSpec((s * s, rph, wph, Cp), lambda t: (t, 0, 0, 0)),
                pl.BlockSpec((9, Cp), lambda t: (0, 0)),
                pl.BlockSpec((1, Cp), lambda t: (0, 0)),
                pl.BlockSpec((Cp, Op), lambda t: (0, 0)),
                pl.BlockSpec((1, Op), lambda t: (0, 0)),
            ],
            out_specs=pl.BlockSpec((1, th * Wo_t, Op), lambda t: (t, 0, 0)),
            scratch_shapes=[pltpu.VMEM((th * Wo_t, Cp), jnp.bfloat16)],
        ),
        compiler_params=pltpu.CompilerParams(
            dimension_semantics=("parallel",),
            vmem_limit_bytes=vmem_limit),
    )(x_tiles, dww, dwb, pww, pwb)

    # (T, th*Wo_t, Op) bf16 -> NCHW f32, dropping row/col/channel padding.
    # TODO(synk): at model scope hand the bf16 NHWC tiles to the next block
    # directly instead of converting back to NCHW f32 here.
    out = out.reshape(N, R * th, Wo_t, Op)[:, :Ho, :Wo, :O]
    return jnp.transpose(out, (0, 3, 1, 2)).astype(jnp.float32)


# ----------------------------------------------------------------------------
# Pure-JAX reference (mirrors PyTorch Conv2d_tf + BN(eval) + ReLU6 semantics).
# ----------------------------------------------------------------------------
def conv_dw_reference(x_nchw, params, stride):
    dw_w, bn1, pw_w, bn2 = (params["dw_weight"], params["bn1"],
                            params["pw_weight"], params["bn2"])
    C = x_nchw.shape[1]
    _, ph0, ph1 = _tf_same_pad(x_nchw.shape[2], stride)
    _, pw0, pw1 = _tf_same_pad(x_nchw.shape[3], stride)
    y = jax.lax.conv_general_dilated(
        x_nchw, dw_w, window_strides=(stride, stride),
        padding=((ph0, ph1), (pw0, pw1)), feature_group_count=C,
        dimension_numbers=("NCHW", "OIHW", "NCHW"),
        precision=jax.lax.Precision.HIGHEST)
    s, b = _fold_bn(*bn1)
    y = jnp.clip(y * s[None, :, None, None] + b[None, :, None, None], 0.0, 6.0)
    y = jax.lax.conv_general_dilated(
        y, pw_w, window_strides=(1, 1), padding="VALID",
        dimension_numbers=("NCHW", "OIHW", "NCHW"),
        precision=jax.lax.Precision.HIGHEST)
    s, b = _fold_bn(*bn2)
    return jnp.clip(y * s[None, :, None, None] + b[None, :, None, None], 0.0, 6.0)


# ----------------------------------------------------------------------------
if __name__ == "__main__":
    N, inp, oup, H, W = 2, 4, 8, 16, 16

    key = jax.random.PRNGKey(0)
    k = jax.random.split(key, 10)
    x = jax.random.normal(k[0], (N, inp, H, W), jnp.float32)

    params = {
        # nn.Conv2d(inp, inp, 3, stride, 1, groups=inp, bias=False)
        "dw_weight": jax.random.normal(k[1], (inp, 1, 3, 3), jnp.float32) * 0.2,
        # nn.BatchNorm2d(inp): (gamma, beta, running_mean, running_var)
        "bn1": (jax.random.uniform(k[2], (inp,), minval=0.5, maxval=1.5),
                jax.random.normal(k[3], (inp,)) * 0.1,
                jax.random.normal(k[4], (inp,)) * 0.1,
                jax.random.uniform(k[5], (inp,), minval=0.5, maxval=1.5)),
        # nn.Conv2d(inp, oup, 1, 1, 0, bias=False)
        "pw_weight": jax.random.normal(k[6], (oup, inp, 1, 1), jnp.float32) * 0.2,
        # nn.BatchNorm2d(oup)
        "bn2": (jax.random.uniform(k[7], (oup,), minval=0.5, maxval=1.5),
                jax.random.normal(k[8], (oup,)) * 0.1,
                jax.random.normal(k[9], (oup,)) * 0.1,
                jax.random.uniform(k[0], (oup,), minval=0.5, maxval=1.5)),
    }

    fwd = jax.jit(conv_dw_forward, static_argnums=2)
    ref_fn = jax.jit(conv_dw_reference, static_argnums=2)

    for stride in (1, 2):
        out = jax.block_until_ready(fwd(x, params, stride))
        ref = jax.block_until_ready(ref_fn(x, params, stride))
        Ho, Wo = -(-H // stride), -(-W // stride)
        assert out.shape == (N, oup, Ho, Wo), out.shape
        # Tolerance accounts for the bf16 activation / bf16-MXU (f32 acc) path.
        err = float(jnp.max(jnp.abs(out - ref)))
        assert jnp.allclose(out, ref, rtol=5e-2, atol=1e-1), err

    print("KERNEL_OK")
</pallas_src>

<mosaic_0001>
module attributes {stable_mosaic.version = 11 : i64} {
  func.func @_conv_dw_kernel(%arg0: i32, %arg1: memref<1x18x18x128xbf16, #tpu.memory_space<vmem>>, %arg2: memref<9x128xf32, #tpu.memory_space<vmem>>, %arg3: memref<1x128xf32, #tpu.memory_space<vmem>>, %arg4: memref<128x128xbf16, #tpu.memory_space<vmem>>, %arg5: memref<1x128xf32, #tpu.memory_space<vmem>>, %arg6: memref<1x256x128xbf16, #tpu.memory_space<vmem>>, %arg7: memref<256x128xbf16, #tpu.memory_space<vmem>>) attributes {dimension_semantics = [#tpu.dimension_semantics<parallel>], iteration_bounds = array<i64: 2>, scalar_prefetch = 0 : i64, scratch_operands = 1 : i64, tpu.core_type = #tpu.core_type<tc>, window_params = [{transform_indices = @transform_0, window_bounds = array<i64: 1, 18, 18, 128>}, {pipeline_mode = #tpu.pipeline_mode<synchronous>, transform_indices = @transform_1, window_bounds = array<i64: 9, 128>}, {pipeline_mode = #tpu.pipeline_mode<synchronous>, transform_indices = @transform_2, window_bounds = array<i64: 1, 128>}, {pipeline_mode = #tpu.pipeline_mode<synchronous>, transform_indices = @transform_3, window_bounds = array<i64: 128, 128>}, {pipeline_mode = #tpu.pipeline_mode<synchronous>, transform_indices = @transform_4, window_bounds = array<i64: 1, 128>}, {transform_indices = @transform_5, window_bounds = array<i64: 1, 256, 128>}]} {
    %cst = arith.constant 0.000000e+00 : f32
    %0 = vector.broadcast %cst : f32 to vector<8x16x128xf32>
    %c0 = arith.constant 0 : index
    %c0_0 = arith.constant 0 : index
    %c0_1 = arith.constant 0 : index
    %c0_2 = arith.constant 0 : index
    %1 = vector.load %arg1[%c0, %c0_0, %c0_1, %c0_2] : memref<1x18x18x128xbf16, #tpu.memory_space<vmem>>, vector<1x10x16x128xbf16>
    %2 = vector.shape_cast %1 : vector<1x10x16x128xbf16> to vector<10x16x128xbf16>
    %3 = arith.extf %2 : vector<10x16x128xbf16> to vector<10x16x128xf32>
    %4 = vector.extract_strided_slice %3 {offsets = [0, 0, 0], sizes = [8, 16, 128], strides = [1, 1, 1]} : vector<10x16x128xf32> to vector<8x16x128xf32>
    %c0_3 = arith.constant 0 : index
    %c0_4 = arith.constant 0 : index
    %5 = vector.load %arg2[%c0_3, %c0_4] : memref<9x128xf32, #tpu.memory_space<vmem>>, vector<1x128xf32>
    %6 = vector.shape_cast %5 : vector<1x128xf32> to vector<128xf32>
    %7 = vector.shape_cast %6 : vector<128xf32> to vector<1x1x128xf32>
    %8 = vector.broadcast %7 : vector<1x1x128xf32> to vector<8x16x128xf32>
    %9 = arith.mulf %4, %8 : vector<8x16x128xf32>
    %10 = arith.addf %0, %9 : vector<8x16x128xf32>
    %11 = vector.extract_strided_slice %3 {offsets = [1, 0, 0], sizes = [8, 16, 128], strides = [1, 1, 1]} : vector<10x16x128xf32> to vector<8x16x128xf32>
    %c3 = arith.constant 3 : index
    %c0_5 = arith.constant 0 : index
    %12 = vector.load %arg2[%c3, %c0_5] : memref<9x128xf32, #tpu.memory_space<vmem>>, vector<1x128xf32>
    %13 = vector.shape_cast %12 : vector<1x128xf32> to vector<128xf32>
    %14 = vector.shape_cast %13 : vector<128xf32> to vector<1x1x128xf32>
    %15 = vector.broadcast %14 : vector<1x1x128xf32> to vector<8x16x128xf32>
    %16 = arith.mulf %11, %15 : vector<8x16x128xf32>
    %17 = arith.addf %10, %16 : vector<8x16x128xf32>
    %18 = vector.extract_strided_slice %3 {offsets = [2, 0, 0], sizes = [8, 16, 128], strides = [1, 1, 1]} : vector<10x16x128xf32> to vector<8x16x128xf32>
    %c6 = arith.constant 6 : index
    %c0_6 = arith.constant 0 : index
    %19 = vector.load %arg2[%c6, %c0_6] : memref<9x128xf32, #tpu.memory_space<vmem>>, vector<1x128xf32>
    %20 = vector.shape_cast %19 : vector<1x128xf32> to vector<128xf32>
    %21 = vector.shape_cast %20 : vector<128xf32> to vector<1x1x128xf32>
    %22 = vector.broadcast %21 : vector<1x1x128xf32> to vector<8x16x128xf32>
    %23 = arith.mulf %18, %22 : vector<8x16x128xf32>
    %24 = arith.addf %17, %23 : vector<8x16x128xf32>
    %c0_7 = arith.constant 0 : index
    %c0_8 = arith.constant 0 : index
    %c1 = arith.constant 1 : index
    %c0_9 = arith.constant 0 : index
    %25 = vector.load %arg1[%c0_7, %c0_8, %c1, %c0_9] : memref<1x18x18x128xbf16, #tpu.memory_space<vmem>>, vector<1x10x16x128xbf16>
    %26 = vector.shape_cast %25 : vector<1x10x16x128xbf16> to vector<10x16x128xbf16>
    %27 = arith.extf %26 : vector<10x16x128xbf16> to vector<10x16x128xf32>
    %28 = vector.extract_strided_slice %27 {offsets = [0, 0, 0], sizes = [8, 16, 128], strides = [1, 1, 1]} : vector<10x16x128xf32> to vector<8x16x128xf32>
    %c1_10 = arith.constant 1 : index
    %c0_11 = arith.constant 0 : index
    %29 = vector.load %arg2[%c1_10, %c0_11] : memref<9x128xf32, #tpu.memory_space<vmem>>, vector<1x128xf32>
    %30 = vector.shape_cast %29 : vector<1x128xf32> to vector<128xf32>
    %31 = vector.shape_cast %30 : vector<128xf32> to vector<1x1x128xf32>
    %32 = vector.broadcast %31 : vector<1x1x128xf32> to vector<8x16x128xf32>
    %33 = arith.mulf %28, %32 : vector<8x16x128xf32>
    %34 = arith.addf %24, %33 : vector<8x16x128xf32>
    %35 = vector.extract_strided_slice %27 {offsets = [1, 0, 0], sizes = [8, 16, 128], strides = [1, 1, 1]} : vector<10x16x128xf32> to vector<8x16x128xf32>
    %c4 = arith.constant 4 : index
    %c0_12 = arith.constant 0 : index
    %36 = vector.load %arg2[%c4, %c0_12] : memref<9x128xf32, #tpu.memory_space<vmem>>, vector<1x128xf32>
    %37 = vector.shape_cast %36 : vector<1x128xf32> to vector<128xf32>
    %38 = vector.shape_cast %37 : vector<128xf32> to vector<1x1x128xf32>
    %39 = vector.broadcast %38 : vector<1x1x128xf32> to vector<8x16x128xf32>
    %40 = arith.mulf %35, %39 : vector<8x16x128xf32>
    %41 = arith.addf %34, %40 : vector<8x16x128xf32>
    %42 = vector.extract_strided_slice %27 {offsets = [2, 0, 0], sizes = [8, 16, 128], strides = [1, 1, 1]} : vector<10x16x128xf32> to vector<8x16x128xf32>
    %c7 = arith.constant 7 : index
    %c0_13 = arith.constant 0 : index
    %43 = vector.load %arg2[%c7, %c0_13] : memref<9x128xf32, #tpu.memory_space<vmem>>, vector<1x128xf32>
    %44 = vector.shape_cast %43 : vector<1x128xf32> to vector<128xf32>
    %45 = vector.shape_cast %44 : vector<128xf32> to vector<1x1x128xf32>
    %46 = vector.broadcast %45 : vector<1x1x128xf32> to vector<8x16x128xf32>
    %47 = arith.mulf %42, %46 : vector<8x16x128xf32>
    %48 = arith.addf %41, %47 : vector<8x16x128xf32>
    %c0_14 = arith.constant 0 : index
    %c0_15 = arith.constant 0 : index
    %c2 = arith.constant 2 : index
    %c0_16 = arith.constant 0 : index
    %49 = vector.load %arg1[%c0_14, %c0_15, %c2, %c0_16] : memref<1x18x18x128xbf16, #tpu.memory_space<vmem>>, vector<1x10x16x128xbf16>
    %50 = vector.shape_cast %49 : vector<1x10x16x128xbf16> to vector<10x16x128xbf16>
    %51 = arith.extf %50 : vector<10x16x128xbf16> to vector<10x16x128xf32>
    %52 = vector.extract_strided_slice %51 {offsets = [0, 0, 0], sizes = [8, 16, 128], strides = [1, 1, 1]} : vector<10x16x128xf32> to vector<8x16x128xf32>
    %c2_17 = arith.constant 2 : index
    %c0_18 = arith.constant 0 : index
    %53 = vector.load %arg2[%c2_17, %c0_18] : memref<9x128xf32, #tpu.memory_space<vmem>>, vector<1x128xf32>
    %54 = vector.shape_cast %53 : vector<1x128xf32> to vector<128xf32>
    %55 = vector.shape_cast %54 : vector<128xf32> to vector<1x1x128xf32>
    %56 = vector.broadcast %55 : vector<1x1x128xf32> to vector<8x16x128xf32>
    %57 = arith.mulf %52, %56 : vector<8x16x128xf32>
    %58 = arith.addf %48, %57 : vector<8x16x128xf32>
    %59 = vector.extract_strided_slice %51 {offsets = [1, 0, 0], sizes = [8, 16, 128], strides = [1, 1, 1]} : vector<10x16x128xf32> to vector<8x16x128xf32>
    %c5 = arith.constant 5 : index
    %c0_19 = arith.constant 0 : index
    %60 = vector.load %arg2[%c5, %c0_19] : memref<9x128xf32, #tpu.memory_space<vmem>>, vector<1x128xf32>
    %61 = vector.shape_cast %60 : vector<1x128xf32> to vector<128xf32>
    %62 = vector.shape_cast %61 : vector<128xf32> to vector<1x1x128xf32>
    %63 = vector.broadcast %62 : vector<1x1x128xf32> to vector<8x16x128xf32>
    %64 = arith.mulf %59, %63 : vector<8x16x128xf32>
    %65 = arith.addf %58, %64 : vector<8x16x128xf32>
    %66 = vector.extract_strided_slice %51 {offsets = [2, 0, 0], sizes = [8, 16, 128], strides = [1, 1, 1]} : vector<10x16x128xf32> to vector<8x16x128xf32>
    %c8 = arith.constant 8 : index
    %c0_20 = arith.constant 0 : index
    %67 = vector.load %arg2[%c8, %c0_20] : memref<9x128xf32, #tpu.memory_space<vmem>>, vector<1x128xf32>
    %68 = vector.shape_cast %67 : vector<1x128xf32> to vector<128xf32>
    %69 = vector.shape_cast %68 : vector<128xf32> to vector<1x1x128xf32>
    %70 = vector.broadcast %69 : vector<1x1x128xf32> to vector<8x16x128xf32>
    %71 = arith.mulf %66, %70 : vector<8x16x128xf32>
    %72 = arith.addf %65, %71 : vector<8x16x128xf32>
    %c0_21 = arith.constant 0 : index
    %c0_22 = arith.constant 0 : index
    %73 = vector.load %arg3[%c0_21, %c0_22] : memref<1x128xf32, #tpu.memory_space<vmem>>, vector<1x128xf32>
    %74 = vector.shape_cast %73 : vector<1x128xf32> to vector<128xf32>
    %75 = vector.shape_cast %74 : vector<128xf32> to vector<1x1x128xf32>
    %76 = vector.broadcast %75 : vector<1x1x128xf32> to vector<8x16x128xf32>
    %77 = arith.addf %72, %76 : vector<8x16x128xf32>
    %cst_23 = arith.constant 0.000000e+00 : f32
    %cst_24 = arith.constant 6.000000e+00 : f32
    %78 = vector.broadcast %cst_23 : f32 to vector<8x16x128xf32>
    %79 = arith.maximumf %78, %77 : vector<8x16x128xf32>
    %80 = vector.broadcast %cst_24 : f32 to vector<8x16x128xf32>
    %81 = arith.minimumf %80, %79 : vector<8x16x128xf32>
    %82 = arith.truncf %81 : vector<8x16x128xf32> to vector<8x16x128xbf16>
    %83 = vector.shape_cast %82 : vector<8x16x128xbf16> to vector<128x128xbf16>
    %c0_25 = arith.constant 0 : index
    %c0_26 = arith.constant 0 : index
    %84 = vector.load %arg7[%c0_25, %c0_26] : memref<256x128xbf16, #tpu.memory_space<vmem>>, vector<128x128xbf16>
    tpu.vector_store %arg7[%c0_25, %c0_26], %83 {strides = array<i32>} : memref<256x128xbf16, #tpu.memory_space<vmem>>, vector<128x128xbf16>,
    %cst_27 = arith.constant 0.000000e+00 : f32
    %85 = vector.broadcast %cst_27 : f32 to vector<8x16x128xf32>
    %c0_28 = arith.constant 0 : index
    %c8_29 = arith.constant 8 : index
    %c0_30 = arith.constant 0 : index
    %c0_31 = arith.constant 0 : index
    %86 = vector.load %arg1[%c0_28, %c8_29, %c0_30, %c0_31] : memref<1x18x18x128xbf16, #tpu.memory_space<vmem>>, vector<1x10x16x128xbf16>
    %87 = vector.shape_cast %86 : vector<1x10x16x128xbf16> to vector<10x16x128xbf16>
    %88 = arith.extf %87 : vector<10x16x128xbf16> to vector<10x16x128xf32>
    %89 = vector.extract_strided_slice %88 {offsets = [0, 0, 0], sizes = [8, 16, 128], strides = [1, 1, 1]} : vector<10x16x128xf32> to vector<8x16x128xf32>
    %c0_32 = arith.constant 0 : index
    %c0_33 = arith.constant 0 : index
    %90 = vector.load %arg2[%c0_32, %c0_33] : memref<9x128xf32, #tpu.memory_space<vmem>>, vector<1x128xf32>
    %91 = vector.shape_cast %90 : vector<1x128xf32> to vector<128xf32>
    %92 = vector.shape_cast %91 : vector<128xf32> to vector<1x1x128xf32>
    %93 = vector.broadcast %92 : vector<1x1x128xf32> to vector<8x16x128xf32>
    %94 = arith.mulf %89, %93 : vector<8x16x128xf32>
    %95 = arith.addf %85, %94 : vector<8x16x128xf32>
    %96 = vector.extract_strided_slice %88 {offsets = [1, 0, 0], sizes = [8, 16, 128], strides = [1, 1, 1]} : vector<10x16x128xf32> to vector<8x16x128xf32>
    %c3_34 = arith.constant 3 : index
    %c0_35 = arith.constant 0 : index
    %97 = vector.load %arg2[%c3_34, %c0_35] : memref<9x128xf32, #tpu.memory_space<vmem>>, vector<1x128xf32>
    %98 = vector.shape_cast %97 : vector<1x128xf32> to vector<128xf32>
    %99 = vector.shape_cast %98 : vector<128xf32> to vector<1x1x128xf32>
    %100 = vector.broadcast %99 : vector<1x1x128xf32> to vector<8x16x128xf32>
    %101 = arith.mulf %96, %100 : vector<8x16x128xf32>
    %102 = arith.addf %95, %101 : vector<8x16x128xf32>
    %103 = vector.extract_strided_slice %88 {offsets = [2, 0, 0], sizes = [8, 16, 128], strides = [1, 1, 1]} : vector<10x16x128xf32> to vector<8x16x128xf32>
    %c6_36 = arith.constant 6 : index
    %c0_37 = arith.constant 0 : index
    %104 = vector.load %arg2[%c6_36, %c0_37] : memref<9x128xf32, #tpu.memory_space<vmem>>, vector<1x128xf32>
    %105 = vector.shape_cast %104 : vector<1x128xf32> to vector<128xf32>
    %106 = vector.shape_cast %105 : vector<128xf32> to vector<1x1x128xf32>
    %107 = vector.broadcast %106 : vector<1x1x128xf32> to vector<8x16x128xf32>
    %108 = arith.mulf %103, %107 : vector<8x16x128xf32>
    %109 = arith.addf %102, %108 : vector<8x16x128xf32>
    %c0_38 = arith.constant 0 : index
    %c8_39 = arith.constant 8 : index
    %c1_40 = arith.constant 1 : index
    %c0_41 = arith.constant 0 : index
    %110 = vector.load %arg1[%c0_38, %c8_39, %c1_40, %c0_41] : memref<1x18x18x128xbf16, #tpu.memory_space<vmem>>, vector<1x10x16x128xbf16>
    %111 = vector.shape_cast %110 : vector<1x10x16x128xbf16> to vector<10x16x128xbf16>
    %112 = arith.extf %111 : vector<10x16x128xbf16> to vector<10x16x128xf32>
    %113 = vector.extract_strided_slice %112 {offsets = [0, 0, 0], sizes = [8, 16, 128], strides = [1, 1, 1]} : vector<10x16x128xf32> to vector<8x16x128xf32>
    %c1_42 = arith.constant 1 : index
    %c0_43 = arith.constant 0 : index
    %114 = vector.load %arg2[%c1_42, %c0_43] : memref<9x128xf32, #tpu.memory_space<vmem>>, vector<1x128xf32>
    %115 = vector.shape_cast %114 : vector<1x128xf32> to vector<128xf32>
    %116 = vector.shape_cast %115 : vector<128xf32> to vector<1x1x128xf32>
    %117 = vector.broadcast %116 : vector<1x1x128xf32> to vector<8x16x128xf32>
    %118 = arith.mulf %113, %117 : vector<8x16x128xf32>
    %119 = arith.addf %109, %118 : vector<8x16x128xf32>
    %120 = vector.extract_strided_slice %112 {offsets = [1, 0, 0], sizes = [8, 16, 128], strides = [1, 1, 1]} : vector<10x16x128xf32> to vector<8x16x128xf32>
    %c4_44 = arith.constant 4 : index
    %c0_45 = arith.constant 0 : index
    %121 = vector.load %arg2[%c4_44, %c0_45] : memref<9x128xf32, #tpu.memory_space<vmem>>, vector<1x128xf32>
    %122 = vector.shape_cast %121 : vector<1x128xf32> to vector<128xf32>
    %123 = vector.shape_cast %122 : vector<128xf32> to vector<1x1x128xf32>
    %124 = vector.broadcast %123 : vector<1x1x128xf32> to vector<8x16x128xf32>
    %125 = arith.mulf %120, %124 : vector<8x16x128xf32>
    %126 = arith.addf %119, %125 : vector<8x16x128xf32>
    %127 = vector.extract_strided_slice %112 {offsets = [2, 0, 0], sizes = [8, 16, 128], strides = [1, 1, 1]} : vector<10x16x128xf32> to vector<8x16x128xf32>
    %c7_46 = arith.constant 7 : index
    %c0_47 = arith.constant 0 : index
    %128 = vector.load %arg2[%c7_46, %c0_47] : memref<9x128xf32, #tpu.memory_space<vmem>>, vector<1x128xf32>
    %129 = vector.shape_cast %128 : vector<1x128xf32> to vector<128xf32>
    %130 = vector.shape_cast %129 : vector<128xf32> to vector<1x1x128xf32>
    %131 = vector.broadcast %130 : vector<1x1x128xf32> to vector<8x16x128xf32>
    %132 = arith.mulf %127, %131 : vector<8x16x128xf32>
    %133 = arith.addf %126, %132 : vector<8x16x128xf32>
    %c0_48 = arith.constant 0 : index
    %c8_49 = arith.constant 8 : index
    %c2_50 = arith.constant 2 : index
    %c0_51 = arith.constant 0 : index
    %134 = vector.load %arg1[%c0_48, %c8_49, %c2_50, %c0_51] : memref<1x18x18x128xbf16, #tpu.memory_space<vmem>>, vector<1x10x16x128xbf16>
    %135 = vector.shape_cast %134 : vector<1x10x16x128xbf16> to vector<10x16x128xbf16>
    %136 = arith.extf %135 : vector<10x16x128xbf16> to vector<10x16x128xf32>
    %137 = vector.extract_strided_slice %136 {offsets = [0, 0, 0], sizes = [8, 16, 128], strides = [1, 1, 1]} : vector<10x16x128xf32> to vector<8x16x128xf32>
    %c2_52 = arith.constant 2 : index
    %c0_53 = arith.constant 0 : index
    %138 = vector.load %arg2[%c2_52, %c0_53] : memref<9x128xf32, #tpu.memory_space<vmem>>, vector<1x128xf32>
    %139 = vector.shape_cast %138 : vector<1x128xf32> to vector<128xf32>
    %140 = vector.shape_cast %139 : vector<128xf32> to vector<1x1x128xf32>
    %141 = vector.broadcast %140 : vector<1x1x128xf32> to vector<8x16x128xf32>
    %142 = arith.mulf %137, %141 : vector<8x16x128xf32>
    %143 = arith.addf %133, %142 : vector<8x16x128xf32>
    %144 = vector.extract_strided_slice %136 {offsets = [1, 0, 0], sizes = [8, 16, 128], strides = [1, 1, 1]} : vector<10x16x128xf32> to vector<8x16x128xf32>
    %c5_54 = arith.constant 5 : index
    %c0_55 = arith.constant 0 : index
    %145 = vector.load %arg2[%c5_54, %c0_55] : memref<9x128xf32, #tpu.memory_space<vmem>>, vector<1x128xf32>
    %146 = vector.shape_cast %145 : vector<1x128xf32> to vector<128xf32>
    %147 = vector.shape_cast %146 : vector<128xf32> to vector<1x1x128xf32>
    %148 = vector.broadcast %147 : vector<1x1x128xf32> to vector<8x16x128xf32>
    %149 = arith.mulf %144, %148 : vector<8x16x128xf32>
    %150 = arith.addf %143, %149 : vector<8x16x128xf32>
    %151 = vector.extract_strided_slice %136 {offsets = [2, 0, 0], sizes = [8, 16, 128], strides = [1, 1, 1]} : vector<10x16x128xf32> to vector<8x16x128xf32>
    %c8_56 = arith.constant 8 : index
    %c0_57 = arith.constant 0 : index
    %152 = vector.load %arg2[%c8_56, %c0_57] : memref<9x128xf32, #tpu.memory_space<vmem>>, vector<1x128xf32>
    %153 = vector.shape_cast %152 : vector<1x128xf32> to vector<128xf32>
    %154 = vector.shape_cast %153 : vector<128xf32> to vector<1x1x128xf32>
    %155 = vector.broadcast %154 : vector<1x1x128xf32> to vector<8x16x128xf32>
    %156 = arith.mulf %151, %155 : vector<8x16x128xf32>
    %157 = arith.addf %150, %156 : vector<8x16x128xf32>
    %c0_58 = arith.constant 0 : index
    %c0_59 = arith.constant 0 : index
    %158 = vector.load %arg3[%c0_58, %c0_59] : memref<1x128xf32, #tpu.memory_space<vmem>>, vector<1x128xf32>
    %159 = vector.shape_cast %158 : vector<1x128xf32> to vector<128xf32>
    %160 = vector.shape_cast %159 : vector<128xf32> to vector<1x1x128xf32>
    %161 = vector.broadcast %160 : vector<1x1x128xf32> to vector<8x16x128xf32>
    %162 = arith.addf %157, %161 : vector<8x16x128xf32>
    %cst_60 = arith.constant 0.000000e+00 : f32
    %cst_61 = arith.constant 6.000000e+00 : f32
    %163 = vector.broadcast %cst_60 : f32 to vector<8x16x128xf32>
    %164 = arith.maximumf %163, %162 : vector<8x16x128xf32>
    %165 = vector.broadcast %cst_61 : f32 to vector<8x16x128xf32>
    %166 = arith.minimumf %165, %164 : vector<8x16x128xf32>
    %167 = arith.truncf %166 : vector<8x16x128xf32> to vector<8x16x128xbf16>
    %168 = vector.shape_cast %167 : vector<8x16x128xbf16> to vector<128x128xbf16>
    %c128 = arith.constant 128 : index
    %c0_62 = arith.constant 0 : index
    %169 = vector.load %arg7[%c128, %c0_62] : memref<256x128xbf16, #tpu.memory_space<vmem>>, vector<128x128xbf16>
    tpu.vector_store %arg7[%c128, %c0_62], %168 {strides = array<i32>} : memref<256x128xbf16, #tpu.memory_space<vmem>>, vector<128x128xbf16>,
    %c0_63 = arith.constant 0 : index
    %c0_64 = arith.constant 0 : index
    %170 = vector.load %arg7[%c0_63, %c0_64] : memref<256x128xbf16, #tpu.memory_space<vmem>>, vector<256x128xbf16>
    %c0_65 = arith.constant 0 : index
    %c0_66 = arith.constant 0 : index
    %171 = vector.load %arg4[%c0_65, %c0_66] : memref<128x128xbf16, #tpu.memory_space<vmem>>, vector<128x128xbf16>
    %cst_67 = arith.constant dense<0.000000e+00> : vector<256x128xf32>
    %172 = tpu.matmul %170, %171, %cst_67 {dimension_numbers = #tpu.dot_dimension_numbers<[1], [0], [0], [1], [0, 0, 1, 1], [], []>} : vector<256x128xbf16>, vector<128x128xbf16>, vector<256x128xf32> -> vector<256x128xf32>
    %c0_68 = arith.constant 0 : index
    %c0_69 = arith.constant 0 : index
    %173 = vector.load %arg5[%c0_68, %c0_69] : memref<1x128xf32, #tpu.memory_space<vmem>>, vector<1x128xf32>
    %174 = vector.shape_cast %173 : vector<1x128xf32> to vector<128xf32>
    %175 = vector.shape_cast %174 : vector<128xf32> to vector<1x128xf32>
    %176 = vector.broadcast %175 : vector<1x128xf32> to vector<256x128xf32>
    %177 = arith.addf %172, %176 : vector<256x128xf32>
    %cst_70 = arith.constant 0.000000e+00 : f32
    %cst_71 = arith.constant 6.000000e+00 : f32
    %178 = vector.broadcast %cst_70 : f32 to vector<256x128xf32>
    %179 = arith.maximumf %178, %177 : vector<256x128xf32>
    %180 = vector.broadcast %cst_71 : f32 to vector<256x128xf32>
    %181 = arith.minimumf %180, %179 : vector<256x128xf32>
    %182 = arith.truncf %181 : vector<256x128xf32> to vector<256x128xbf16>
    %c0_72 = arith.constant 0 : index
    %c0_73 = arith.constant 0 : index
    %c0_74 = arith.constant 0 : index
    %183 = vector.load %arg6[%c0_72, %c0_73, %c0_74] : memref<1x256x128xbf16, #tpu.memory_space<vmem>>, vector<1x256x128xbf16>
    %184 = vector.shape_cast %183 : vector<1x256x128xbf16> to vector<256x128xbf16>
    %185 = vector.shape_cast %182 : vector<256x128xbf16> to vector<1x256x128xbf16>
    tpu.vector_store %arg6[%c0_72, %c0_73, %c0_74], %185 {strides = array<i32>} : memref<1x256x128xbf16, #tpu.memory_space<vmem>>, vector<1x256x128xbf16>,
    return
  }
  func.func @transform_0(%arg0: i32) -> (i32, i32, i32, i32) {
    %c0_i32 = arith.constant 0 : i32
    %c0_i32_0 = arith.constant 0 : i32
    %c0_i32_1 = arith.constant 0 : i32
    %c0_i32_2 = arith.constant 0 : i32
    return %arg0, %c0_i32, %c0_i32_0, %c0_i32_1 : i32, i32, i32, i32
  }
  func.func @transform_1(%arg0: i32) -> (i32, i32) {
    %c0_i32 = arith.constant 0 : i32
    %c0_i32_0 = arith.constant 0 : i32
    %c0_i32_1 = arith.constant 0 : i32
    return %c0_i32, %c0_i32_0 : i32, i32
  }
  func.func @transform_2(%arg0: i32) -> (i32, i32) {
    %c0_i32 = arith.constant 0 : i32
    %c0_i32_0 = arith.constant 0 : i32
    %c0_i32_1 = arith.constant 0 : i32
    return %c0_i32, %c0_i32_0 : i32, i32
  }
  func.func @transform_3(%arg0: i32) -> (i32, i32) {
    %c0_i32 = arith.constant 0 : i32
    %c0_i32_0 = arith.constant 0 : i32
    %c0_i32_1 = arith.constant 0 : i32
    return %c0_i32, %c0_i32_0 : i32, i32
  }
  func.func @transform_4(%arg0: i32) -> (i32, i32) {
    %c0_i32 = arith.constant 0 : i32
    %c0_i32_0 = arith.constant 0 : i32
    %c0_i32_1 = arith.constant 0 : i32
    return %c0_i32, %c0_i32_0 : i32, i32
  }
  func.func @transform_5(%arg0: i32) -> (i32, i32, i32) {
    %c0_i32 = arith.constant 0 : i32
    %c0_i32_0 = arith.constant 0 : i32
    %c0_i32_1 = arith.constant 0 : i32
    return %arg0, %c0_i32, %c0_i32_0 : i32, i32, i32
  }
}

</mosaic_0001>

<bundles_post_ra>
// kernel: conv_dw_forward.1
= control target key start
LH: loop header
LB: loop body
LE: loop exit
PB: predicated region body
PF: predicated region fallthrough
CT: control target
= control target key end

     0   :  { %s3231_s18 = smov 0   ;;  %s4699_s0 = inlined_call_operand.vmem [shape: bf16[2,18,18,128], index: 0, kind: input, shape index: {}]   ;;  %s4700_s1 = inlined_call_operand.vmem [shape: f32[9,128], index: 1, kind: input, shape index: {}]   ;;  %s4701_s2 = inlined_call_operand.vmem [shape: f32[1,128], index: 2, kind: input, shape index: {}]   ;;  %s4702_s3 = inlined_call_operand.vmem [shape: bf16[128,128], index: 3, kind: input, shape index: {}]   ;;  %s4703_s4 = inlined_call_operand.vmem [shape: f32[1,128], index: 4, kind: input, shape index: {}]   ;;  %s4704_s5 = inlined_call_operand.vmem [shape: bf16[2,256,128], index: 5, kind: output, shape index: {}]  }
   0x1 LB: > { %s2780_s19 = sadd.s32 4294967295, %s3199_s18   ;;  %p2784_p0 = scmp.ge.s32.totalorder %s3199_s18, 1  ;;  %s3199_s18 = sphi %s3231_s18, %s15_s18  }
   0x2   : > { %p187_p1 = scmp.lt.s32.totalorder %s3199_s18, 3 }
   0x4   : > { %p188_p2 = pnand %p2784_p0, %p187_p1 }
   0x5   : > { %v3165_v0 = vld [vmem:[%s4702_s3] sm:$0xff] (!%p188_p2)   ;;  %p215_p3 = scmp.lt.s32.totalorder (!%p188_p2), %s2780_s19, 1  ;;  %v3166_v1 = vld [vmem:[%s4702_s3 + $0x8] sm:$0xff] (!%p188_p2)   ;;  %v3167_v2 = vld [vmem:[%s4702_s3 + $0x10] sm:$0xff] (!%p188_p2)   ;;  %vm450_vm0 = vcmask (!%p188_p2), 1046528   ;;  %vm846_vm1 = vcmask (!%p188_p2), 1045504  }
   0x6   : > { %191 = sbr.rel (%p188_p2) target bundleno = 579 (0x243), region = 40  ;;  %3092 = vmatprep.subr.bf16.mxu0 (!%p188_p2), %v3165_v0  ;;  %3140 = vmatprep.subr.bf16.mxu1 (!%p188_p2), %v3165_v0  ;;  %v3168_v3 = vld [vmem:[%s4702_s3 + $0x18] sm:$0xff] (!%p188_p2)   ;;  %v3271_v11 = vld [vmem:[%s4700_s1] ss:$0 sm:$0xff] (!%p188_p2)  ;;  %v3276_v12 = vld [vmem:[%s4700_s1 + $0x3] ss:$0 sm:$0xff] (!%p188_p2) }
   0x7   : > { %3093 = vmatpush3.bf16.msra.mxu0 (!%p188_p2), %v3165_v0  ;;  %3148 = vmatpush3.bf16.msra.mxu1 (!%p188_p2), %v3165_v0  ;;  %v3281_v13 = vld [vmem:[%s4700_s1 + $0x6] ss:$0 sm:$0xff] (!%p188_p2)  ;;  %v3301_v23 = vld [vmem:[%s4700_s1 + $0x1] ss:$0 sm:$0xff] (!%p188_p2)  ;;  %v3306_v24 = vld [vmem:[%s4700_s1 + $0x4] ss:$0 sm:$0xff] (!%p188_p2) }
   0x8   : > { %3094 = vmatprep.subr.bf16.mxu0 (!%p188_p2), %v3166_v1  ;;  %3141 = vmatprep.subr.bf16.mxu1 (!%p188_p2), %v3166_v1  ;;  %v3169_v25 = vld [vmem:[%s4702_s3 + $0x20] sm:$0xff] (!%p188_p2)   ;;  %v3170_v43 = vld [vmem:[%s4702_s3 + $0x28] sm:$0xff] (!%p188_p2)  }
   0x9   : > { %v3334_v38 = vld [vmem:[%s4700_s1 + $0x7] ss:$0 sm:$0xff] (!%p188_p2)  ;;  %v3354_v59 = vld [vmem:[%s4700_s1 + $0x2] ss:$0 sm:$0xff] (!%p188_p2)  ;;  %v3362_v0 = vld [vmem:[%s4700_s1 + $0x5] ss:$0 sm:$0xff] (!%p188_p2) }
   0xb   : > { %3095 = vmatpush3.bf16.msra.mxu0 (!%p188_p2), %v3166_v1  ;;  %3149 = vmatpush3.bf16.msra.mxu1 (!%p188_p2), %v3166_v1  ;;  %v3171_v1 = vld [vmem:[%s4702_s3 + $0x30] sm:$0xff] (!%p188_p2)  }
   0xc   : > { %3096 = vmatprep.subr.bf16.mxu0 (!%p188_p2), %v3167_v2  ;;  %3142 = vmatprep.subr.bf16.mxu1 (!%p188_p2), %v3167_v2 }
   0xd   : > { %s4706_s19 = smov (!%p215_p3, %s2780_s19), 1 }
   0xe   : > { %s3156_s26 = smul.u32 216, %s4706_s19  ;;  %s2891_s10 = sshll.u32 %s4706_s19, 7 }
   0xf   : > { %3097 = vmatpush3.bf16.msra.mxu0 %v3167_v2  ;;  %3150 = vmatpush3.bf16.msra.mxu1 %v3167_v2  ;;  %s4654_s13 = scalar_lea.vmem %s4704_s5, %s2891_s10 }
  0x10   : > { %s3254_s29 = scalar_lea.vmem %s4699_s0, %s3156_s26  ;;  %3098 = vmatprep.subr.bf16.mxu0 %v3168_v3  ;;  %3143 = vmatprep.subr.bf16.mxu1 %v3168_v3 }
  0x11   : > { %v2925_v4 = vld [vmem:[%s3254_s29] sm:$0xff]   ;;  %v228_v5 = vld [vmem:[%s3254_s29 + $0xc] sm:$0xff]   ;;  %v3044_v6 = vld [vmem:[%s3254_s29 + $0x18] sm:$0xff]  }
  0x12   : > { %v2926_v7 = vunpack.c.l.bf16 %v2925_v4  ;;  %v3262_v8 = vunpack.c.h.bf16 %v2925_v4  ;;  %v3264_v9 = vunpack.c.l.bf16 %v3044_v6  ;;  %v3266_v10 = vunpack.c.h.bf16 %v3044_v6  ;;  %v3288_v16 = vld [vmem:[%s3254_s29 + $0x8] sm:$0x1]  ;;  %v378_v17 = vld [vmem:[%s3254_s29 + $0x14] sm:$0x1]  ;;  %v379_v18 = vld [vmem:[%s3254_s29 + $0x20] sm:$0x1] }
  0x13   : > { %v3283_v14 = vunpack.c.l.bf16 %v228_v5  ;;  %v3285_v15 = vunpack.c.h.bf16 %v228_v5  ;;  %v387_v22 = vunpack.c.l.bf16 %v3288_v16  ;;  %v3317_v29 = vunpack.c.l.bf16 %v378_v17  ;;  %3099 = vmatpush3.bf16.msra.mxu0 %v3168_v3  ;;  %3151 = vmatpush3.bf16.msra.mxu1 %v3168_v3  ;;  %v773_v48 = vld [vmem:[%s3254_s29] sm:$0xe]  ;;  %v774_v53 = vld [vmem:[%s3254_s29 + $0xc] sm:$0xe]  ;;  %v775_v58 = vld [vmem:[%s3254_s29 + $0x18] sm:$0xe] }
  0x14   : > { %v271_v19 = vmul.f32 %v2926_v7, %v3271_v11  ;;  %v272_v20 = vmul.f32 %v3262_v8, %v3271_v11  ;;  %v345_v21 = vmul.f32 %v3264_v9, %v3281_v13  ;;  %v346_v28 = vmul.f32 %v3266_v10, %v3281_v13  ;;  %3100 = vmatprep.subr.bf16.mxu0 %v3169_v25 }
  0x15   : > { %v308_v26 = vmul.f32 %v3276_v12, %v3283_v14  ;;  %v309_v27 = vmul.f32 %v3276_v12, %v3285_v15  ;;  %v3319_v30 = vunpack.c.l.bf16 %v379_v18  ;;  %v402_v31 = vmul.f32 %v2926_v7, %v3301_v23  ;;  %3144 = vmatprep.subr.bf16.mxu1 %v3169_v25 }
  0x16   : > { %v403_v32 = vmul.f32 %v3262_v8, %v3301_v23  ;;  %v404_v33 = vmul.f32 %v3301_v23, %v387_v22  ;;  %v528_v36 = vmul.f32 %v3306_v24, %v3283_v14  ;;  %v529_v37 = vmul.f32 %v3306_v24, %v3285_v15 }
  0x17   : > { %v324_v34 = vadd.f32 %v308_v26, %v271_v19  ;;  %v325_v35 = vadd.f32 %v309_v27, %v272_v20  ;;  %v451_v39 = vrot.slane %v402_v31, 1  ;;  %v530_v42 = vmul.f32 %v3306_v24, %v3317_v29  ;;  %3101 = vmatpush3.bf16.msra.mxu0 %v3169_v25  ;;  %3152 = vmatpush3.bf16.msra.mxu1 %v3169_v25  ;;  %v3383_v26 = vld [vmem:[%s4700_s1 + $0x8] ss:$0 sm:$0xff] }
  0x18   : > { %v452_v40 = vrot.slane %v403_v32, 1  ;;  %v454_v41 = vrot.slane %v404_v33, 1  ;;  %v576_v46 = vrot.slane %v528_v36, 1  ;;  %v577_v47 = vrot.slane %v529_v37, 1  ;;  %3102 = vmatprep.subr.bf16.mxu0 %v3170_v43  ;;  %3145 = vmatprep.subr.bf16.mxu1 %v3170_v43 }
  0x19   : > { %v361_v44 = vadd.f32 %v345_v21, %v324_v34  ;;  %v362_v45 = vadd.f32 %v346_v28, %v325_v35  ;;  %v579_v51 = vrot.slane %v530_v42, 1  ;;  %v653_v52 = vmul.f32 %v3264_v9, %v3334_v38 }
  0x1a   : > { %v453_v49 = vsel %vm450_vm0, %v451_v39, %v452_v40  ;;  %v455_v50 = vsel %vm450_vm0, %v452_v40, %v454_v41  ;;  %v578_v56 = vsel %vm450_vm0, %v576_v46, %v577_v47  ;;  %v654_v57 = vmul.f32 %v3266_v10, %v3334_v38  ;;  %v3048_v40 = vld [vmem:[%s3254_s29 + $0x60] sm:$0xff]  }
  0x1b   : > { %v507_v54 = vadd.f32 %v453_v49, %v361_v44  ;;  %v508_v55 = vadd.f32 %v455_v50, %v362_v45  ;;  %v580_v60 = vsel %vm450_vm0, %v577_v47, %v579_v51  ;;  %v655_v61 = vmul.f32 %v3334_v38, %v3319_v30  ;;  %3103 = vmatpush3.bf16.msra.mxu0 %v3170_v43  ;;  %v3049_v45 = vld [vmem:[%s3254_s29 + $0x78] sm:$0xff]   ;;  %v2800_v50 = vld [vmem:[%s3254_s29 + $0x6c] sm:$0xff]  }
  0x1c   : > { %v701_v62 = vrot.slane %v653_v52, 1  ;;  %v783_v63 = vunpack.c.l.bf16 %v773_v48  ;;  %v702_v4 = vrot.slane %v654_v57, 1  ;;  %v784_v5 = vunpack.c.l.bf16 %v774_v53  ;;  %3153 = vmatpush3.bf16.msra.mxu1 %v3170_v43  ;;  %3104 = vmatprep.subr.bf16.mxu0 %v3171_v1 }
  0x1d   : > { %v632_v2 = vadd.f32 %v578_v56, %v507_v54  ;;  %v633_v3 = vadd.f32 %v580_v60, %v508_v55  ;;  %v704_v6 = vrot.slane %v655_v61, 1  ;;  %v3367_v7 = vunpack.c.l.bf16 %v775_v58  ;;  %3146 = vmatprep.subr.bf16.mxu1 %v3171_v1 }
  0x1e   : > { %v798_v17 = vmul.f32 %v3354_v59, %v783_v63  ;;  %v799_v18 = vmul.f32 %v3262_v8, %v3354_v59  ;;  %v703_v19 = vsel %vm450_vm0, %v701_v62, %v702_v4  ;;  %v800_v20 = vmul.f32 %v3354_v59, %v387_v22  ;;  %v3172_v22 = vld [vmem:[%s4702_s3 + $0x38] sm:$0xff]   ;;  %v3415_v62 = vld [vmem:[%s4701_s2] ss:$0 sm:$0xff] }
  0x1f   : > { %v3377_v21 = vmul.f32 %v3354_v59, %v784_v5  ;;  %v924_v25 = vmul.f32 %v3362_v0, %v784_v5  ;;  %v705_v8 = vsel %vm450_vm0, %v702_v4, %v704_v6  ;;  %v757_v27 = vadd.f32 %v703_v19, %v632_v2  ;;  %3105 = vmatpush3.bf16.msra.mxu0 %v3171_v1  ;;  %v3422_v2 = vld [vmem:[%s3254_s29 + $0x68] sm:$0x1] }
  0x20   : > { %v847_v28 = vrot.slane %v798_v17, 2  ;;  %v848_v16 = vrot.slane %v799_v18, 2  ;;  %v758_v31 = vadd.f32 %v705_v8, %v633_v3  ;;  %v850_v32 = vrot.slane %v800_v20, 2  ;;  %3154 = vmatpush3.bf16.msra.mxu1 %v3171_v1  ;;  %3106 = vmatprep.subr.bf16.mxu0 %v3172_v22  ;;  %v2822_v17 = vld [vmem:[%s3254_s29 + $0x74] sm:$0x1] }
  0x21   : > { %v852_v33 = vrot.slane %v3377_v21, 2  ;;  %v925_v34 = vmul.f32 %v3362_v0, %v3285_v15  ;;  %v926_v36 = vmul.f32 %v3362_v0, %v3317_v29  ;;  %v972_v37 = vrot.slane %v924_v25, 2  ;;  %3147 = vmatprep.subr.bf16.mxu1 %v3172_v22  ;;  %v2823_v18 = vld [vmem:[%s3254_s29 + $0x80] sm:$0x1] }
  0x22   : > { %v849_v35 = vsel %vm846_vm1, %v847_v28, %v848_v16  ;;  %v1049_v39 = vmul.f32 %v3383_v26, %v3367_v7  ;;  %v851_v41 = vsel %vm846_vm1, %v848_v16, %v850_v32  ;;  %v1050_v44 = vmul.f32 %v3266_v10, %v3383_v26 }
  0x23   : > { %v903_v42 = vadd.f32 %v849_v35, %v757_v27  ;;  %v973_v43 = vrot.slane %v925_v34, 2  ;;  %v904_v46 = vadd.f32 %v851_v41, %v758_v31  ;;  %v975_v47 = vrot.slane %v926_v36, 2  ;;  %3107 = vmatpush3.bf16.msra.mxu0 %v3172_v22 }
  0x24   : > { %v1051_v48 = vmul.f32 %v3383_v26, %v3319_v30  ;;  %v1097_v49 = vrot.slane %v1049_v39, 2  ;;  %v1098_v52 = vrot.slane %v1050_v44, 2  ;;  %v2946_v53 = vunpack.c.l.bf16 %v3048_v40  ;;  %3155 = vmatpush3.bf16.msra.mxu1 %v3172_v22 }
  0x25   : > { %v974_v51 = vsel %vm846_vm1, %v972_v37, %v973_v43  ;;  %v3406_v54 = vunpack.c.h.bf16 %v3048_v40  ;;  %v976_v55 = vsel %vm846_vm1, %v973_v43, %v975_v47  ;;  %v3409_v58 = vunpack.c.l.bf16 %v3049_v45 }
  0x26   : > { %v1028_v56 = vadd.f32 %v974_v51, %v903_v42  ;;  %v1100_v57 = vrot.slane %v1051_v48, 2  ;;  %v1029_v60 = vadd.f32 %v976_v55, %v904_v46  ;;  %v1099_v61 = vsel %vm846_vm1, %v1097_v49, %v1098_v52 }
  0x27   : > { %v3417_v63 = vunpack.c.h.bf16 %v3049_v45  ;;  %v3419_v1 = vunpack.c.l.bf16 %v2800_v50  ;;  %v3425_v5 = vunpack.c.h.bf16 %v2800_v50  ;;  %v1286_v6 = vmul.f32 %v2946_v53, %v3271_v11 }
  0x28   : > { %v1101_v3 = vsel %vm846_vm1, %v1098_v52, %v1100_v57  ;;  %v1153_v4 = vadd.f32 %v1099_v61, %v1028_v56  ;;  %v1287_v20 = vmul.f32 %v3406_v54, %v3271_v11  ;;  %v1360_v8 = vmul.f32 %v3409_v58, %v3281_v13  ;;  %v2835_v61 = vld [vmem:[%s3254_s29 + $0x6c] sm:$0xe] }
  0x29   : > { %v1154_v19 = vadd.f32 %v1101_v3, %v1029_v60  ;;  %v1323_v25 = vmul.f32 %v3276_v12, %v3419_v1  ;;  %v1324_v28 = vmul.f32 %v3276_v12, %v3425_v5  ;;  %v1361_v16 = vmul.f32 %v3417_v63, %v3281_v13  ;;  %v2834_v60 = vld [vmem:[%s3254_s29 + $0x60] sm:$0xe] }
  0x2a   : > { %v1176_v27 = vadd.f32 %v3415_v62, %v1153_v4  ;;  %v1402_v22 = vunpack.c.l.bf16 %v3422_v2  ;;  %v3443_v34 = vunpack.c.l.bf16 %v2822_v17  ;;  %v3445_v35 = vunpack.c.l.bf16 %v2823_v18  ;;  %v2836_v17 = vld [vmem:[%s3254_s29 + $0x78] sm:$0xe] }
  0x2b   : > { %v1177_v31 = vadd.f32 %v3415_v62, %v1154_v19  ;;  %v1339_v32 = vadd.f32 %v1323_v25, %v1286_v6  ;;  %v1340_v37 = vadd.f32 %v1324_v28, %v1287_v20  ;;  %v1417_v39 = vmul.f32 %v2946_v53, %v3301_v23 }
  0x2c   : > { %v1192_v36 = vmax.f32 %v1176_v27, 0.0  ;;  %v1418_v40 = vmul.f32 %v3406_v54, %v3301_v23  ;;  %v1419_v43 = vmul.f32 %v3301_v23, %v1402_v22  ;;  %v1542_v44 = vmul.f32 %v3306_v24, %v3419_v1 }
  0x2d   : > { %v1193_v41 = vmax.f32 %v1177_v31, 0.0  ;;  %v1376_v42 = vadd.f32 %v1360_v8, %v1339_v32  ;;  %v1377_v46 = vadd.f32 %v1361_v16, %v1340_v37  ;;  %v1465_v47 = vrot.slane %v1417_v39, 1 }
  0x2e   : > { %v1208_v45 = vmin.f32 %v1192_v36, 6.0  ;;  %v1466_v48 = vrot.slane %v1418_v40, 1  ;;  %v1468_v50 = vrot.slane %v1419_v43, 1  ;;  %v1543_v51 = vmul.f32 %v3306_v24, %v3425_v5 }
  0x2f   : > { %v1209_v49 = vmin.f32 %v1193_v41, 6.0  ;;  %v1544_v52 = vmul.f32 %v3306_v24, %v3443_v34  ;;  %v1590_v55 = vrot.slane %v1542_v44, 1  ;;  %v1667_v56 = vmul.f32 %v3409_v58, %v3334_v38 }
  0x30   : > { %v1467_v53 = vsel %vm450_vm0, %v1465_v47, %v1466_v48  ;;  %v1668_v57 = vmul.f32 %v3417_v63, %v3334_v38  ;;  %v1469_v3 = vsel %vm450_vm0, %v1466_v48, %v1468_v50  ;;  %v1591_v6 = vrot.slane %v1543_v51, 1 }
  0x31   : > { %v1224_v2 = vpack.c.bf16 %v1209_v49, %v1208_v45  ;;  %v1521_v4 = vadd.f32 %v1467_v53, %v1376_v42  ;;  %v1522_v18 = vadd.f32 %v1469_v3, %v1377_v46  ;;  %v1593_v19 = vrot.slane %v1544_v52, 1 }
  0x32   : > { %v1669_v20 = vmul.f32 %v3334_v38, %v3445_v35  ;;  %v1715_v25 = vrot.slane %v1667_v56, 1  ;;  %v1592_v8 = vsel %vm450_vm0, %v1590_v55, %v1591_v6  ;;  %v1716_v27 = vrot.slane %v1668_v57, 1 }
  0x33   : > { %3108 = vmatprep.mubr.bf16.mxu0 %v1224_v2  ;;  %v1797_v28 = vunpack.c.l.bf16 %v2834_v60  ;;  %v1798_v16 = vunpack.c.l.bf16 %v2835_v61  ;;  %v1594_v31 = vsel %vm450_vm0, %v1591_v6, %v1593_v19  ;;  %v1646_v32 = vadd.f32 %v1592_v8, %v1521_v4  ;;  %v232_v60 = vld [vmem:[%s3254_s29 + $0x24] sm:$0xff]  }
  0x34   : > { %v1718_v36 = vrot.slane %v1669_v20, 1  ;;  %v3470_v37 = vunpack.c.l.bf16 %v2836_v17  ;;  %v1647_v39 = vadd.f32 %v1594_v31, %v1522_v18  ;;  %v1717_v40 = vsel %vm450_vm0, %v1715_v25, %v1716_v27 }
  0x35   : > { %v1812_v41 = vmul.f32 %v3354_v59, %v1797_v28  ;;  %v1813_v42 = vmul.f32 %v3406_v54, %v3354_v59  ;;  %v1771_v44 = vadd.f32 %v1717_v40, %v1646_v32  ;;  %v1814_v45 = vmul.f32 %v3354_v59, %v1402_v22 }
  0x36   : > { %v1719_v43 = vsel %vm450_vm0, %v1716_v27, %v1718_v36  ;;  %v3479_v46 = vmul.f32 %v3354_v59, %v1798_v16  ;;  %v1937_v50 = vmul.f32 %v3362_v0, %v1798_v16  ;;  %v1938_v54 = vmul.f32 %v3362_v0, %v3425_v5  ;;  %v380_v36 = vld [vmem:[%s3254_s29 + $0x2c] sm:$0x1] }
  0x37   : > { %v1772_v47 = vadd.f32 %v1719_v43, %v1647_v39  ;;  %v1860_v48 = vrot.slane %v1812_v41, 2  ;;  %v1861_v49 = vrot.slane %v1813_v42, 2  ;;  %v1863_v51 = vrot.slane %v1814_v45, 2 }
  0x38   : > { %v1865_v52 = vrot.slane %v3479_v46, 2  ;;  %v1939_v53 = vmul.f32 %v3362_v0, %v3443_v34  ;;  %v1985_v22 = vrot.slane %v1937_v50, 2  ;;  %v2062_v56 = vmul.f32 %v3383_v26, %v3470_v37 }
  0x39   : > { %v1862_v55 = vsel %vm846_vm1, %v1860_v48, %v1861_v49  ;;  %v2063_v57 = vmul.f32 %v3417_v63, %v3383_v26  ;;  %v1864_v61 = vsel %vm846_vm1, %v1861_v49, %v1863_v51  ;;  %v1986_v3 = vrot.slane %v1938_v54, 2 }
  0x3a   : > { %v1916_v2 = vadd.f32 %v1862_v55, %v1771_v44  ;;  %v1988_v4 = vrot.slane %v1939_v53, 2  ;;  %v1917_v6 = vadd.f32 %v1864_v61, %v1772_v47  ;;  %v2064_v17 = vmul.f32 %v3383_v26, %v3445_v35 }
  0x3b   : > { %v2110_v18 = vrot.slane %v2062_v56, 2  ;;  %v2111_v19 = vrot.slane %v2063_v57, 2  ;;  %v1987_v20 = vsel %vm846_vm1, %v1985_v22, %v1986_v3  ;;  %v3498_v8 = vunpack.c.l.bf16 %v232_v60 }
  0x3c   : > { %v1989_v25 = vsel %vm846_vm1, %v1986_v3, %v1988_v4  ;;  %v3500_v27 = vunpack.c.h.bf16 %v232_v60  ;;  %v2041_v28 = vadd.f32 %v1987_v20, %v1916_v2  ;;  %v2113_v32 = vrot.slane %v2064_v17, 2 }
  0x3d   : > { %v2042_v16 = vadd.f32 %v1989_v25, %v1917_v6  ;;  %v2112_v31 = vsel %vm846_vm1, %v2110_v18, %v2111_v19  ;;  %v273_v39 = vmul.f32 %v3271_v11, %v3283_v14  ;;  %v274_v40 = vmul.f32 %v3271_v11, %v3285_v15 }
  0x3e   : > { %v310_v41 = vmul.f32 %v3264_v9, %v3276_v12  ;;  %v311_v42 = vmul.f32 %v3266_v10, %v3276_v12  ;;  %v2114_v43 = vsel %vm846_vm1, %v2111_v19, %v2113_v32  ;;  %v2166_v44 = vadd.f32 %v2112_v31, %v2041_v28  ;;  %v776_v31 = vld [vmem:[%s3254_s29 + $0x24] sm:$0xe] }
  0x3f   : > { %v347_v45 = vmul.f32 %v3281_v13, %v3498_v8  ;;  %v348_v47 = vmul.f32 %v3281_v13, %v3500_v27  ;;  %v2167_v48 = vadd.f32 %v2114_v43, %v2042_v16  ;;  %v3517_v51 = vunpack.c.l.bf16 %v380_v36 }
  0x40   : > { %v326_v49 = vadd.f32 %v310_v41, %v273_v39  ;;  %v327_v50 = vadd.f32 %v311_v42, %v274_v40  ;;  %v2189_v54 = vadd.f32 %v3415_v62, %v2166_v44  ;;  %v405_v53 = vmul.f32 %v3301_v23, %v3283_v14 }
  0x41   : > { %v406_v55 = vmul.f32 %v3301_v23, %v3285_v15  ;;  %v407_v22 = vmul.f32 %v3301_v23, %v3317_v29  ;;  %v2190_v56 = vadd.f32 %v3415_v62, %v2167_v48  ;;  %v531_v61 = vmul.f32 %v3264_v9, %v3306_v24 }
  0x42   : > { %v363_v57 = vadd.f32 %v347_v45, %v326_v49  ;;  %v364_v60 = vadd.f32 %v348_v47, %v327_v50  ;;  %v2205_v2 = vmax.f32 %v2189_v54, 0.0  ;;  %v456_v3 = vrot.slane %v405_v53, 1 }
  0x43   : > { %v457_v4 = vrot.slane %v406_v55, 1  ;;  %v459_v6 = vrot.slane %v407_v22, 1  ;;  %v2206_v17 = vmax.f32 %v2190_v56, 0.0  ;;  %v532_v14 = vmul.f32 %v3266_v10, %v3306_v24 }
  0x44   : > { %v533_v18 = vmul.f32 %v3306_v24, %v3319_v30  ;;  %v581_v19 = vrot.slane %v531_v61, 1  ;;  %v2221_v20 = vmin.f32 %v2205_v2, 6.0  ;;  %v656_v16 = vmul.f32 %v3334_v38, %v3498_v8 }
  0x45   : > { %v458_v25 = vsel %vm450_vm0, %v456_v3, %v457_v4  ;;  %v460_v28 = vsel %vm450_vm0, %v457_v4, %v459_v6  ;;  %v2222_v32 = vmin.f32 %v2206_v17, 6.0  ;;  %v582_v40 = vrot.slane %v532_v14, 1 }
  0x46   : > { %v509_v36 = vadd.f32 %v458_v25, %v363_v57  ;;  %v510_v39 = vadd.f32 %v460_v28, %v364_v60  ;;  %v584_v41 = vrot.slane %v533_v18, 1  ;;  %v657_v42 = vmul.f32 %v3334_v38, %v3500_v27  ;;  %v2804_v25 = vld [vmem:[%s3254_s29 + $0x84] sm:$0xff]  }
  0x47   : > { %v658_v43 = vmul.f32 %v3334_v38, %v3517_v51  ;;  %v706_v44 = vrot.slane %v656_v16, 1  ;;  %v2237_v45 = vpack.c.bf16 %v2222_v32, %v2221_v20  ;;  %v583_v47 = vsel %vm450_vm0, %v581_v19, %v582_v40 }
  0x48   : > { %v3543_v48 = vunpack.c.l.bf16 %v776_v31  ;;  %v802_v49 = vmul.f32 %v3354_v59, %v3285_v15  ;;  %v585_v50 = vsel %vm450_vm0, %v582_v40, %v584_v41  ;;  %v634_v54 = vadd.f32 %v583_v47, %v509_v36 }
  0x49   : > { %v707_v53 = vrot.slane %v657_v42, 1  ;;  %v709_v55 = vrot.slane %v658_v43, 1  ;;  %3124 = vmatprep.mubr.bf16.mxu1 %v2237_v45  ;;  %v635_v22 = vadd.f32 %v585_v50, %v510_v39  ;;  %v803_v56 = vmul.f32 %v3354_v59, %v3317_v29  ;;  %v2824_v50 = vld [vmem:[%s3254_s29 + $0x8c] sm:$0x1] }
  0x4a   : > { %v853_v57 = vrot.slane %v802_v49, 2  ;;  %v927_v60 = vmul.f32 %v3362_v0, %v3367_v7  ;;  %v928_v15 = vmul.f32 %v3266_v10, %v3362_v0  ;;  %v929_v3 = vmul.f32 %v3362_v0, %v3319_v30 }
  0x4b   : > { %v708_v61 = vsel %vm450_vm0, %v706_v44, %v707_v53  ;;  %v710_v2 = vsel %vm450_vm0, %v707_v53, %v709_v55  ;;  %v855_v17 = vrot.slane %v803_v56, 2  ;;  %v1052_v20 = vmul.f32 %v3383_v26, %v3543_v48 }
  0x4c   : > { %v759_v4 = vadd.f32 %v708_v61, %v634_v54  ;;  %v760_v6 = vadd.f32 %v710_v2, %v635_v22  ;;  %v854_v29 = vsel %vm846_vm1, %v852_v33, %v853_v57  ;;  %v977_v14 = vrot.slane %v927_v60, 2 }
  0x4d   : > { %v978_v18 = vrot.slane %v928_v15, 2  ;;  %v980_v19 = vrot.slane %v929_v3, 2  ;;  %v856_v28 = vsel %vm846_vm1, %v853_v57, %v855_v17  ;;  %v1053_v31 = vmul.f32 %v3383_v26, %v3500_v27 }
  0x4e   : > { %v905_v16 = vadd.f32 %v854_v29, %v759_v4  ;;  %v1054_v21 = vmul.f32 %v3383_v26, %v3517_v51  ;;  %v906_v32 = vadd.f32 %v856_v28, %v760_v6  ;;  %v1102_v39 = vrot.slane %v1052_v20, 2 }
  0x4f   : > { %v979_v33 = vsel %vm846_vm1, %v977_v14, %v978_v18  ;;  %v981_v36 = vsel %vm846_vm1, %v978_v18, %v980_v19  ;;  %v1103_v41 = vrot.slane %v1053_v31, 2  ;;  %v3571_v43 = vunpack.c.l.bf16 %v2804_v25 }
  0x50   : > { %v1030_v40 = vadd.f32 %v979_v33, %v905_v16  ;;  %v1105_v42 = vrot.slane %v1054_v21, 2  ;;  %v1031_v44 = vadd.f32 %v981_v36, %v906_v32  ;;  %v3573_v45 = vunpack.c.h.bf16 %v2804_v25 }
  0x51   : > { %v1288_v47 = vmul.f32 %v3271_v11, %v3419_v1  ;;  %v1289_v49 = vmul.f32 %v3271_v11, %v3425_v5  ;;  %v1104_v54 = vsel %vm846_vm1, %v1102_v39, %v1103_v41  ;;  %v1325_v55 = vmul.f32 %v3409_v58, %v3276_v12 }
  0x52   : > { %v1106_v53 = vsel %vm846_vm1, %v1103_v41, %v1105_v42  ;;  %v1326_v22 = vmul.f32 %v3417_v63, %v3276_v12  ;;  %v1155_v56 = vadd.f32 %v1104_v54, %v1030_v40  ;;  %v1362_v60 = vmul.f32 %v3281_v13, %v3571_v43 }
  0x53   : > { %v1156_v57 = vadd.f32 %v1106_v53, %v1031_v44  ;;  %v1363_v61 = vmul.f32 %v3281_v13, %v3573_v45  ;;  %v1341_v2 = vadd.f32 %v1325_v55, %v1288_v47  ;;  %v3590_v3 = vunpack.c.l.bf16 %v2824_v50  ;;  %v2837_v44 = vld [vmem:[%s3254_s29 + $0x84] sm:$0xe] }
  0x54   : > { %v1342_v15 = vadd.f32 %v1326_v22, %v1289_v49  ;;  %v1420_v4 = vmul.f32 %v3301_v23, %v3419_v1  ;;  %v1178_v6 = vadd.f32 %v3415_v62, %v1155_v56  ;;  %v1421_v17 = vmul.f32 %v3301_v23, %v3425_v5 }
  0x55   : > { %v1179_v29 = vadd.f32 %v3415_v62, %v1156_v57  ;;  %v1422_v14 = vmul.f32 %v3301_v23, %v3443_v34  ;;  %v1378_v18 = vadd.f32 %v1362_v60, %v1341_v2  ;;  %v1545_v25 = vmul.f32 %v3409_v58, %v3306_v24 }
  0x56   : > { %v1379_v19 = vadd.f32 %v1363_v61, %v1342_v15  ;;  %v1470_v20 = vrot.slane %v1420_v4, 1  ;;  %v1194_v28 = vmax.f32 %v1178_v6, 0.0  ;;  %v1471_v1 = vrot.slane %v1421_v17, 1 }
  0x57   : > { %v1195_v16 = vmax.f32 %v1179_v29, 0.0  ;;  %v1473_v31 = vrot.slane %v1422_v14, 1  ;;  %v1546_v21 = vmul.f32 %v3417_v63, %v3306_v24  ;;  %v1547_v32 = vmul.f32 %v3306_v24, %v3445_v35 }
  0x58   : > { %v1595_v33 = vrot.slane %v1545_v25, 1  ;;  %v1670_v36 = vmul.f32 %v3334_v38, %v3571_v43  ;;  %v1210_v39 = vmin.f32 %v1194_v28, 6.0  ;;  %v1472_v41 = vsel %vm450_vm0, %v1470_v20, %v1471_v1 }
  0x59   : > { %v1211_v40 = vmin.f32 %v1195_v16, 6.0  ;;  %v1474_v42 = vsel %vm450_vm0, %v1471_v1, %v1473_v31  ;;  %v1523_v47 = vadd.f32 %v1472_v41, %v1378_v18  ;;  %v1596_v50 = vrot.slane %v1546_v21, 1 }
  0x5a   : > { %v1524_v49 = vadd.f32 %v1474_v42, %v1379_v19  ;;  %v1598_v54 = vrot.slane %v1547_v32, 1  ;;  %v1671_v55 = vmul.f32 %v3334_v38, %v3573_v45  ;;  %v1672_v22 = vmul.f32 %v3334_v38, %v3590_v3 }
  0x5b   : > { %v1225_v53 = vpack.c.bf16 %v1211_v40, %v1210_v39  ;;  %v1720_v56 = vrot.slane %v1670_v36, 1  ;;  %v1597_v57 = vsel %vm450_vm0, %v1595_v33, %v1596_v50  ;;  %v3617_v61 = vunpack.c.l.bf16 %v2837_v44  ;;  %v3045_v39 = vld [vmem:[%s3254_s29 + $0x30] sm:$0xff]  }
  0x5c   : > { %v1599_v60 = vsel %vm450_vm0, %v1596_v50, %v1598_v54  ;;  %v1816_v2 = vmul.f32 %v3354_v59, %v3425_v5  ;;  %v1648_v15 = vadd.f32 %v1597_v57, %v1523_v47  ;;  %v1721_v6 = vrot.slane %v1671_v55, 1 }
  0x5d   : > { %3109 = vmatmul.mubr.bf16.vlgmr.msra.gmra.mrb[0].mxu0 %v1225_v53  ;;  %v1649_v4 = vadd.f32 %v1599_v60, %v1524_v49  ;;  %v1723_v29 = vrot.slane %v1672_v22, 1  ;;  %v1817_v17 = vmul.f32 %v3354_v59, %v3443_v34  ;;  %v1940_v18 = vmul.f32 %v3362_v0, %v3470_v37  ;;  %v381_v22 = vld [vmem:[%s3254_s29 + $0x38] sm:$0x1] }
  0x5e   : > { %v1866_v14 = vrot.slane %v1816_v2, 2  ;;  %v1941_v19 = vmul.f32 %v3417_v63, %v3362_v0  ;;  %v1722_v20 = vsel %vm450_vm0, %v1720_v56, %v1721_v6  ;;  %v1942_v25 = vmul.f32 %v3362_v0, %v3445_v35 }
  0x5f   : > { %v1724_v5 = vsel %vm450_vm0, %v1721_v6, %v1723_v29  ;;  %v2065_v28 = vmul.f32 %v3383_v26, %v3617_v61  ;;  %v1773_v16 = vadd.f32 %v1722_v20, %v1648_v15  ;;  %v1868_v31 = vrot.slane %v1817_v17, 2 }
  0x60   : > { %v1774_v34 = vadd.f32 %v1724_v5, %v1649_v4  ;;  %v1867_v1 = vsel %vm846_vm1, %v1865_v52, %v1866_v14  ;;  %v1990_v21 = vrot.slane %v1940_v18, 2  ;;  %v1991_v32 = vrot.slane %v1941_v19, 2 }
  0x61   : > { %v1993_v33 = vrot.slane %v1942_v25, 2  ;;  %v2066_v36 = vmul.f32 %v3383_v26, %v3573_v45  ;;  %v1869_v40 = vsel %vm846_vm1, %v1866_v14, %v1868_v31  ;;  %v1918_v41 = vadd.f32 %v1867_v1, %v1773_v16 }
  0x62   : > { %v2067_v42 = vmul.f32 %v3383_v26, %v3590_v3  ;;  %v2115_v44 = vrot.slane %v2065_v28, 2  ;;  %v1919_v47 = vadd.f32 %v1869_v40, %v1774_v34  ;;  %v1992_v46 = vsel %vm846_vm1, %v1990_v21, %v1991_v32 }
  0x63   : > { %v1994_v52 = vsel %vm846_vm1, %v1991_v32, %v1993_v33  ;;  %v2116_v49 = vrot.slane %v2066_v36, 2  ;;  %v2043_v50 = vadd.f32 %v1992_v46, %v1918_v41  ;;  %v3644_v53 = vunpack.c.l.bf16 %v3045_v39 }
  0x64   : > { %v2118_v54 = vrot.slane %v2067_v42, 2  ;;  %v3646_v55 = vunpack.c.h.bf16 %v3045_v39  ;;  %v2044_v56 = vadd.f32 %v1994_v52, %v1919_v47  ;;  %v275_v60 = vmul.f32 %v3264_v9, %v3271_v11 }
  0x65   : > { %v2117_v57 = vsel %vm846_vm1, %v2115_v44, %v2116_v49  ;;  %v276_v2 = vmul.f32 %v3266_v10, %v3271_v11  ;;  %v312_v6 = vmul.f32 %v3276_v12, %v3498_v8  ;;  %v313_v29 = vmul.f32 %v3276_v12, %v3500_v27 }
  0x66   : > { %v2119_v15 = vsel %vm846_vm1, %v2116_v49, %v2118_v54  ;;  %v2168_v4 = vadd.f32 %v2117_v57, %v2043_v50  ;;  %v349_v14 = vmul.f32 %v3644_v53, %v3281_v13  ;;  %v350_v18 = vmul.f32 %v3646_v55, %v3281_v13 }
  0x67   : > { %v2169_v17 = vadd.f32 %v2119_v15, %v2044_v56  ;;  %v3663_v19 = vunpack.c.l.bf16 %v381_v22  ;;  %v328_v5 = vadd.f32 %v312_v6, %v275_v60  ;;  %v329_v25 = vadd.f32 %v313_v29, %v276_v2  ;;  %v777_v22 = vld [vmem:[%s3254_s29 + $0x30] sm:$0xe] }
  0x68   : > { %v2191_v20 = vadd.f32 %v3415_v62, %v2168_v4  ;;  %v408_v28 = vmul.f32 %v3264_v9, %v3301_v23  ;;  %v409_v34 = vmul.f32 %v3266_v10, %v3301_v23  ;;  %v410_v1 = vmul.f32 %v3301_v23, %v3319_v30 }
  0x69   : > { %v2192_v16 = vadd.f32 %v3415_v62, %v2169_v17  ;;  %v534_v31 = vmul.f32 %v3306_v24, %v3498_v8  ;;  %v365_v32 = vadd.f32 %v349_v14, %v328_v5  ;;  %v366_v33 = vadd.f32 %v350_v18, %v329_v25 }
  0x6a   : > { %v2207_v21 = vmax.f32 %v2191_v20, 0.0  ;;  %v461_v36 = vrot.slane %v408_v28, 1  ;;  %v462_v40 = vrot.slane %v409_v34, 1  ;;  %v464_v41 = vrot.slane %v410_v1, 1 }
  0x6b   : > { %v2208_v39 = vmax.f32 %v2192_v16, 0.0  ;;  %v535_v9 = vmul.f32 %v3306_v24, %v3500_v27  ;;  %v536_v44 = vmul.f32 %v3306_v24, %v3517_v51  ;;  %v586_v47 = vrot.slane %v534_v31, 1 }
  0x6c   : > { %v2223_v42 = vmin.f32 %v2207_v21, 6.0  ;;  %v659_v46 = vmul.f32 %v3644_v53, %v3334_v38  ;;  %v463_v49 = vsel %vm450_vm0, %v461_v36, %v462_v40  ;;  %v465_v50 = vsel %vm450_vm0, %v462_v40, %v464_v41 }
  0x6d   : > { %v2224_v52 = vmin.f32 %v2208_v39, 6.0  ;;  %v587_v54 = vrot.slane %v535_v9, 1  ;;  %v511_v56 = vadd.f32 %v463_v49, %v365_v32  ;;  %v512_v57 = vadd.f32 %v465_v50, %v366_v33 }
  0x6e   : > { %v589_v60 = vrot.slane %v536_v44, 1  ;;  %v660_v2 = vmul.f32 %v3646_v55, %v3334_v38  ;;  %v661_v6 = vmul.f32 %v3334_v38, %v3663_v19  ;;  %v711_v29 = vrot.slane %v659_v46, 1 }
  0x6f   : > { %v2238_v15 = vpack.c.bf16 %v2224_v52, %v2223_v42  ;;  %v588_v4 = vsel %vm450_vm0, %v586_v47, %v587_v54  ;;  %v3690_v20 = vunpack.c.l.bf16 %v777_v22  ;;  %v804_v28 = vmul.f32 %v3354_v59, %v3367_v7  ;;  %v3050_v47 = vld [vmem:[%s3254_s29 + $0x90] sm:$0xff]  }
  0x70   : > { %v590_v17 = vsel %vm450_vm0, %v587_v54, %v589_v60  ;;  %v636_v14 = vadd.f32 %v588_v4, %v511_v56  ;;  %v712_v18 = vrot.slane %v660_v2, 1  ;;  %v714_v25 = vrot.slane %v661_v6, 1 }
  0x71   : > { %3125 = vmatmul.mubr.bf16.vlgmr.msra.gmra.mrb[0].mxu1 %v2238_v15  ;;  %v637_v5 = vadd.f32 %v590_v17, %v512_v57  ;;  %v805_v16 = vmul.f32 %v3266_v10, %v3354_v59  ;;  %v806_v1 = vmul.f32 %v3354_v59, %v3319_v30  ;;  %v930_v31 = vmul.f32 %v3362_v0, %v3543_v48 }
  0x72   : > { %v713_v34 = vsel %vm450_vm0, %v711_v29, %v712_v18  ;;  %v931_v21 = vmul.f32 %v3362_v0, %v3500_v27  ;;  %v715_v32 = vsel %vm450_vm0, %v712_v18, %v714_v25  ;;  %v857_v36 = vrot.slane %v804_v28, 2  ;;  %v2825_v18 = vld [vmem:[%s3254_s29 + $0x98] sm:$0x1] }
  0x73   : > { %v761_v33 = vadd.f32 %v713_v34, %v636_v14  ;;  %v858_v7 = vrot.slane %v805_v16, 2  ;;  %v762_v39 = vadd.f32 %v715_v32, %v637_v5  ;;  %v860_v40 = vrot.slane %v806_v1, 2 }
  0x74   : > { %v932_v10 = vmul.f32 %v3362_v0, %v3517_v51  ;;  %v982_v41 = vrot.slane %v930_v31, 2  ;;  %v983_v30 = vrot.slane %v931_v21, 2  ;;  %v1055_v42 = vmul.f32 %v3383_v26, %v3690_v20 }
  0x75   : > { %v859_v9 = vsel %vm846_vm1, %v857_v36, %v858_v7  ;;  %v1056_v44 = vmul.f32 %v3646_v55, %v3383_v26  ;;  %v861_v46 = vsel %vm846_vm1, %v858_v7, %v860_v40  ;;  %v1057_v50 = vmul.f32 %v3383_v26, %v3663_v19 }
  0x76   : > { %v907_v52 = vadd.f32 %v859_v9, %v761_v33  ;;  %v985_v49 = vrot.slane %v932_v10, 2  ;;  %v908_v54 = vadd.f32 %v861_v46, %v762_v39  ;;  %v984_v22 = vsel %vm846_vm1, %v982_v41, %v983_v30 }
  0x77   : > { %v1107_v56 = vrot.slane %v1055_v42, 2  ;;  %v1108_v57 = vrot.slane %v1056_v44, 2  ;;  %v1110_v15 = vrot.slane %v1057_v50, 2  ;;  %v3717_v4 = vunpack.c.l.bf16 %v3050_v47 }
  0x78   : > { %v986_v60 = vsel %vm846_vm1, %v983_v30, %v985_v49  ;;  %v1032_v2 = vadd.f32 %v984_v22, %v907_v52  ;;  %v3720_v17 = vunpack.c.h.bf16 %v3050_v47  ;;  %v1290_v14 = vmul.f32 %v3409_v58, %v3271_v11 }
  0x79   : > { %v1033_v6 = vadd.f32 %v986_v60, %v908_v54  ;;  %v1109_v29 = vsel %vm846_vm1, %v1107_v56, %v1108_v57  ;;  %v1111_v5 = vsel %vm846_vm1, %v1108_v57, %v1110_v15  ;;  %v1291_v28 = vmul.f32 %v3417_v63, %v3271_v11  ;;  %v2838_v56 = vld [vmem:[%s3254_s29 + $0x90] sm:$0xe] }
  0x7a   : > { %v1157_v25 = vadd.f32 %v1109_v29, %v1032_v2  ;;  %v1327_v16 = vmul.f32 %v3276_v12, %v3571_v43  ;;  %v1328_v1 = vmul.f32 %v3276_v12, %v3573_v45  ;;  %v1364_v31 = vmul.f32 %v3717_v4, %v3281_v13 }
  0x7b   : > { %v1158_v34 = vadd.f32 %v1111_v5, %v1033_v6  ;;  %v1365_v21 = vmul.f32 %v3720_v17, %v3281_v13  ;;  %v3737_v36 = vunpack.c.l.bf16 %v2825_v18  ;;  %v1423_v11 = vmul.f32 %v3409_v58, %v3301_v23 }
  0x7c   : > { %v1180_v32 = vadd.f32 %v3415_v62, %v1157_v25  ;;  %v1343_v33 = vadd.f32 %v1327_v16, %v1290_v14  ;;  %v1344_v39 = vadd.f32 %v1328_v1, %v1291_v28  ;;  %v1424_v12 = vmul.f32 %v3417_v63, %v3301_v23 }
  0x7d   : > { %v1181_v7 = vadd.f32 %v3415_v62, %v1158_v34  ;;  %v1425_v40 = vmul.f32 %v3301_v23, %v3445_v35  ;;  %v1475_v41 = vrot.slane %v1423_v11, 1  ;;  %v1548_v9 = vmul.f32 %v3306_v24, %v3571_v43 }
  0x7e   : > { %v1196_v10 = vmax.f32 %v1180_v32, 0.0  ;;  %v1380_v13 = vadd.f32 %v1364_v31, %v1343_v33  ;;  %v1381_v42 = vadd.f32 %v1365_v21, %v1344_v39  ;;  %v1476_v44 = vrot.slane %v1424_v12, 1 }
  0x7f   : > { %v1197_v30 = vmax.f32 %v1181_v7, 0.0  ;;  %v1478_v58 = vrot.slane %v1425_v40, 1  ;;  %v1549_v46 = vmul.f32 %v3306_v24, %v3573_v45  ;;  %v1550_v52 = vmul.f32 %v3306_v24, %v3590_v3 }
  0x80   : > { %v1212_v47 = vmin.f32 %v1196_v10, 6.0  ;;  %v1600_v49 = vrot.slane %v1548_v9, 1  ;;  %v1477_v50 = vsel %vm450_vm0, %v1475_v41, %v1476_v44  ;;  %v1673_v22 = vmul.f32 %v3717_v4, %v3334_v38  ;;  %v236_v9 = vld [vmem:[%s3254_s29 + $0x3c] sm:$0xff]  }
  0x81   : > { %v1213_v23 = vmin.f32 %v1197_v30, 6.0  ;;  %v1479_v54 = vsel %vm450_vm0, %v1476_v44, %v1478_v58  ;;  %v1525_v57 = vadd.f32 %v1477_v50, %v1380_v13  ;;  %v1601_v2 = vrot.slane %v1549_v46, 1 }
  0x82   : > { %v1526_v60 = vadd.f32 %v1479_v54, %v1381_v42  ;;  %v1603_v15 = vrot.slane %v1550_v52, 1  ;;  %v1674_v29 = vmul.f32 %v3720_v17, %v3334_v38  ;;  %v1675_v24 = vmul.f32 %v3334_v38, %v3737_v36 }
  0x83   : > { %v1226_v6 = vpack.c.bf16 %v1213_v23, %v1212_v47  ;;  %v1725_v14 = vrot.slane %v1673_v22, 1  ;;  %v1602_v18 = vsel %vm450_vm0, %v1600_v49, %v1601_v2  ;;  %v3763_v25 = vunpack.c.l.bf16 %v2838_v56 }
  0x84   : > { %v1604_v5 = vsel %vm450_vm0, %v1601_v2, %v1603_v15  ;;  %v1818_v28 = vmul.f32 %v3354_v59, %v3470_v37  ;;  %v1650_v16 = vadd.f32 %v1602_v18, %v1525_v57  ;;  %v1726_v1 = vrot.slane %v1674_v29, 1  ;;  %v382_v2 = vld [vmem:[%s3254_s29 + $0x44] sm:$0x1] }
  0x85   : > { %3112 = vmatprep.mubr.bf16.mxu0 %v1226_v6  ;;  %v1651_v34 = vadd.f32 %v1604_v5, %v1526_v60  ;;  %v1728_v31 = vrot.slane %v1675_v24, 1  ;;  %v1819_v21 = vmul.f32 %v3417_v63, %v3354_v59  ;;  %v1820_v38 = vmul.f32 %v3354_v59, %v3445_v35  ;;  %v3797_v60 = vld [vmem:[%s4700_s1] ss:$0 sm:$0xff]  ;;  %v3809_v24 = vld [vmem:[%s4700_s1 + $0x3] ss:$0 sm:$0xff] }
  0x86   : > { %v1870_v32 = vrot.slane %v1818_v28, 2  ;;  %v1943_v33 = vmul.f32 %v3362_v0, %v3617_v61  ;;  %v1727_v11 = vsel %vm450_vm0, %v1725_v14, %v1726_v1  ;;  %v1944_v7 = vmul.f32 %v3362_v0, %v3573_v45 }
  0x87   : > { %v1729_v37 = vsel %vm450_vm0, %v1726_v1, %v1728_v31  ;;  %v1945_v39 = vmul.f32 %v3362_v0, %v3590_v3  ;;  %v1775_v12 = vadd.f32 %v1727_v11, %v1650_v16  ;;  %v1871_v40 = vrot.slane %v1819_v21, 2  ;;  %v3818_v16 = vld [vmem:[%s4700_s1 + $0x6] ss:$0 sm:$0xff] }
  0x88   : > { %v1776_v63 = vadd.f32 %v1729_v37, %v1651_v34  ;;  %v1873_v10 = vrot.slane %v1820_v38, 2  ;;  %v1995_v13 = vrot.slane %v1943_v33, 2  ;;  %v1996_v59 = vrot.slane %v1944_v7, 2  ;;  %v3829_v38 = vld [vmem:[%s4700_s1 + $0x1] ss:$0 sm:$0xff] }
  0x89   : > { %v1998_v35 = vrot.slane %v1945_v39, 2  ;;  %v2068_v41 = vmul.f32 %v3383_v26, %v3763_v25  ;;  %v1872_v30 = vsel %vm846_vm1, %v1870_v32, %v1871_v40  ;;  %v2069_v44 = vmul.f32 %v3720_v17, %v3383_v26 }
  0x8a   : > { %v1874_v42 = vsel %vm846_vm1, %v1871_v40, %v1873_v10  ;;  %v2070_v0 = vmul.f32 %v3383_v26, %v3737_v36  ;;  %v1920_v58 = vadd.f32 %v1872_v30, %v1775_v12  ;;  %v1997_v46 = vsel %vm846_vm1, %v1995_v13, %v1996_v59  ;;  %v3842_v40 = vld [vmem:[%s4700_s1 + $0x4] ss:$0 sm:$0xff] }
  0x8b   : > { %v1921_v47 = vadd.f32 %v1874_v42, %v1776_v63  ;;  %v1999_v52 = vsel %vm846_vm1, %v1996_v59, %v1998_v35  ;;  %v2120_v49 = vrot.slane %v2068_v41, 2  ;;  %v2121_v23 = vrot.slane %v2069_v44, 2 }
  0x8c   : > { %v2123_v50 = vrot.slane %v2070_v0, 2  ;;  %v3790_v54 = vunpack.c.l.bf16 %v236_v9  ;;  %v2045_v22 = vadd.f32 %v1997_v46, %v1920_v58  ;;  %v3792_v57 = vunpack.c.h.bf16 %v236_v9  ;;  %v3854_v58 = vld [vmem:[%s4700_s1 + $0x7] ss:$0 sm:$0xff]  ;;  %v778_v46 = vld [vmem:[%s3254_s29 + $0x3c] sm:$0xe] }
  0x8d   : > { %v2046_v56 = vadd.f32 %v1999_v52, %v1921_v47  ;;  %v277_v26 = vmul.f32 %v3797_v60, %v3498_v8  ;;  %v2122_v15 = vsel %vm846_vm1, %v2120_v49, %v2121_v23  ;;  %v278_v29 = vmul.f32 %v3797_v60, %v3500_v27 }
  0x8e   : > { %v2124_v6 = vsel %vm846_vm1, %v2121_v23, %v2123_v50  ;;  %v314_v14 = vmul.f32 %v3809_v24, %v3644_v53  ;;  %v2170_v18 = vadd.f32 %v2122_v15, %v2045_v22  ;;  %v315_v28 = vmul.f32 %v3809_v24, %v3646_v55 }
  0x8f   : > { %v2171_v5 = vadd.f32 %v2124_v6, %v2046_v56  ;;  %v351_v34 = vmul.f32 %v3818_v16, %v3790_v54  ;;  %v352_v31 = vmul.f32 %v3818_v16, %v3792_v57  ;;  %v3824_v21 = vunpack.c.l.bf16 %v382_v2 }
  0x90   : > { %v330_v1 = vadd.f32 %v314_v14, %v277_v26  ;;  %v411_v32 = vmul.f32 %v3829_v38, %v3498_v8  ;;  %v2193_v33 = vadd.f32 %v3415_v62, %v2170_v18  ;;  %v331_v37 = vadd.f32 %v315_v28, %v278_v29 }
  0x91   : > { %v2194_v11 = vadd.f32 %v3415_v62, %v2171_v5  ;;  %v412_v7 = vmul.f32 %v3829_v38, %v3500_v27  ;;  %v413_v12 = vmul.f32 %v3829_v38, %v3517_v51  ;;  %v537_v8 = vmul.f32 %v3842_v40, %v3644_v53 }
  0x92   : > { %v367_v39 = vadd.f32 %v351_v34, %v330_v1  ;;  %v466_v63 = vrot.slane %v411_v32, 1  ;;  %v2209_v10 = vmax.f32 %v2193_v33, 0.0  ;;  %v368_v13 = vadd.f32 %v352_v31, %v331_v37  ;;  %v3871_v1 = vld [vmem:[%s4700_s1 + $0x2] ss:$0 sm:$0xff] }
  0x93   : > { %v2210_v62 = vmax.f32 %v2194_v11, 0.0  ;;  %v467_v59 = vrot.slane %v412_v7, 1  ;;  %v469_v35 = vrot.slane %v413_v12, 1  ;;  %v538_v41 = vmul.f32 %v3842_v40, %v3646_v55  ;;  %v3882_v11 = vld [vmem:[%s4700_s1 + $0x5] ss:$0 sm:$0xff] }
  0x94   : > { %v539_v9 = vmul.f32 %v3842_v40, %v3663_v19  ;;  %v591_v30 = vrot.slane %v537_v8, 1  ;;  %v2225_v42 = vmin.f32 %v2209_v10, 6.0  ;;  %v662_v47 = vmul.f32 %v3854_v58, %v3790_v54 }
  0x95   : > { %v2226_v44 = vmin.f32 %v2210_v62, 6.0  ;;  %v468_v0 = vsel %vm450_vm0, %v466_v63, %v467_v59  ;;  %v470_v52 = vsel %vm450_vm0, %v467_v59, %v469_v35  ;;  %v592_v23 = vrot.slane %v538_v41, 1  ;;  %v3896_v41 = vld [vmem:[%s4700_s1 + $0x8] ss:$0 sm:$0xff] }
  0x96   : > { %v513_v49 = vadd.f32 %v468_v0, %v367_v39  ;;  %v594_v50 = vrot.slane %v539_v9, 1  ;;  %v514_v56 = vadd.f32 %v470_v52, %v368_v13  ;;  %v663_v26 = vmul.f32 %v3854_v58, %v3792_v57 }
  0x97   : > { %v2239_v22 = vpack.c.bf16 %v2226_v44, %v2225_v42  ;;  %v664_v2 = vmul.f32 %v3854_v58, %v3824_v21  ;;  %v593_v15 = vsel %vm450_vm0, %v591_v30, %v592_v23  ;;  %v716_v29 = vrot.slane %v662_v47, 1  ;;  %v2808_v44 = vld [vmem:[%s3254_s29 + $0x9c] sm:$0xff]  }
  0x98   : > { %v595_v6 = vsel %vm450_vm0, %v592_v23, %v594_v50  ;;  %v3866_v14 = vunpack.c.l.bf16 %v778_v46  ;;  %v638_v18 = vadd.f32 %v593_v15, %v513_v49  ;;  %v717_v28 = vrot.slane %v663_v26, 1 }
  0x99   : > { %3128 = vmatprep.mubr.bf16.mxu1 %v2239_v22  ;;  %v639_v5 = vadd.f32 %v595_v6, %v514_v56  ;;  %v719_v34 = vrot.slane %v664_v2, 1  ;;  %v807_v31 = vmul.f32 %v3871_v1, %v3543_v48  ;;  %v808_v32 = vmul.f32 %v3871_v1, %v3500_v27  ;;  %v2826_v6 = vld [vmem:[%s3254_s29 + $0xa4] sm:$0x1] }
  0x9a   : > { %v809_v33 = vmul.f32 %v3871_v1, %v3517_v51  ;;  %v933_v37 = vmul.f32 %v3882_v11, %v3690_v20  ;;  %v718_v7 = vsel %vm450_vm0, %v716_v29, %v717_v28  ;;  %v934_v48 = vmul.f32 %v3882_v11, %v3646_v55 }
  0x9b   : > { %v720_v39 = vsel %vm450_vm0, %v717_v28, %v719_v34  ;;  %v935_v27 = vmul.f32 %v3882_v11, %v3663_v19  ;;  %v763_v51 = vadd.f32 %v718_v7, %v638_v18  ;;  %v862_v63 = vrot.slane %v807_v31, 2 }
  0x9c   : > { %v764_v12 = vadd.f32 %v720_v39, %v639_v5  ;;  %v863_v8 = vrot.slane %v808_v32, 2  ;;  %v865_v10 = vrot.slane %v809_v33, 2  ;;  %v987_v62 = vrot.slane %v933_v37, 2 }
  0x9d   : > { %v988_v13 = vrot.slane %v934_v48, 2  ;;  %v990_v59 = vrot.slane %v935_v27, 2  ;;  %v1058_v9 = vmul.f32 %v3896_v41, %v3866_v14  ;;  %v1059_v30 = vmul.f32 %v3896_v41, %v3792_v57  ;;  %v3934_v27 = vld [vmem:[%s4701_s2] ss:$0 sm:$0xff] }
  0x9e   : > { %v864_v35 = vsel %vm846_vm1, %v862_v63, %v863_v8  ;;  %v1060_v42 = vmul.f32 %v3896_v41, %v3824_v21  ;;  %v866_v0 = vsel %vm846_vm1, %v863_v8, %v865_v10  ;;  %v3908_v26 = vunpack.c.l.bf16 %v2808_v44 }
  0x9f   : > { %v909_v47 = vadd.f32 %v864_v35, %v763_v51  ;;  %v989_v46 = vsel %vm846_vm1, %v987_v62, %v988_v13  ;;  %v991_v52 = vsel %vm846_vm1, %v988_v13, %v990_v59  ;;  %v910_v49 = vadd.f32 %v866_v0, %v764_v12 }
  0xa0   : > { %v1112_v23 = vrot.slane %v1058_v9, 2  ;;  %v1113_v50 = vrot.slane %v1059_v30, 2  ;;  %v1115_v22 = vrot.slane %v1060_v42, 2  ;;  %v3910_v2 = vunpack.c.h.bf16 %v2808_v44 }
  0xa1   : > { %v1034_v56 = vadd.f32 %v989_v46, %v909_v47  ;;  %v1292_v15 = vmul.f32 %v3797_v60, %v3571_v43  ;;  %v1035_v29 = vadd.f32 %v991_v52, %v910_v49  ;;  %v1293_v28 = vmul.f32 %v3797_v60, %v3573_v45 }
  0xa2   : > { %v1114_v18 = vsel %vm846_vm1, %v1112_v23, %v1113_v50  ;;  %v1116_v5 = vsel %vm846_vm1, %v1113_v50, %v1115_v22  ;;  %v1329_v31 = vmul.f32 %v3809_v24, %v3717_v4  ;;  %v1330_v32 = vmul.f32 %v3809_v24, %v3720_v17  ;;  %v2839_v50 = vld [vmem:[%s3254_s29 + $0x9c] sm:$0xe] }
  0xa3   : > { %v1159_v34 = vadd.f32 %v1114_v18, %v1034_v56  ;;  %v1366_v33 = vmul.f32 %v3818_v16, %v3908_v26  ;;  %v1160_v37 = vadd.f32 %v1116_v5, %v1035_v29  ;;  %v1367_v7 = vmul.f32 %v3818_v16, %v3910_v2 }
  0xa4   : > { %v3927_v39 = vunpack.c.l.bf16 %v2826_v6  ;;  %v1426_v48 = vmul.f32 %v3829_v38, %v3571_v43  ;;  %v1345_v12 = vadd.f32 %v1329_v31, %v1292_v15  ;;  %v1346_v63 = vadd.f32 %v1330_v32, %v1293_v28 }
  0xa5   : > { %v1182_v51 = vadd.f32 %v3934_v27, %v1159_v34  ;;  %v1427_v8 = vmul.f32 %v3829_v38, %v3573_v45  ;;  %v1183_v10 = vadd.f32 %v3934_v27, %v1160_v37  ;;  %v1428_v62 = vmul.f32 %v3829_v38, %v3590_v3 }
  0xa6   : > { %v1480_v13 = vrot.slane %v1426_v48, 1  ;;  %v1551_v43 = vmul.f32 %v3842_v40, %v3717_v4  ;;  %v1382_v35 = vadd.f32 %v1366_v33, %v1345_v12  ;;  %v1383_v9 = vadd.f32 %v1367_v7, %v1346_v63 }
  0xa7   : > { %v1198_v59 = vmax.f32 %v1182_v51, 0.0  ;;  %v1481_v30 = vrot.slane %v1427_v8, 1  ;;  %v1199_v42 = vmax.f32 %v1183_v10, 0.0  ;;  %v1483_v44 = vrot.slane %v1428_v62, 1 }
  0xa8   : > { %v1552_v0 = vmul.f32 %v3842_v40, %v3720_v17  ;;  %v1553_v47 = vmul.f32 %v3842_v40, %v3737_v36  ;;  %v1605_v49 = vrot.slane %v1551_v43, 1  ;;  %v1676_v23 = vmul.f32 %v3854_v58, %v3908_v26 }
  0xa9   : > { %v1214_v46 = vmin.f32 %v1198_v59, 6.0  ;;  %v1482_v52 = vsel %vm450_vm0, %v1480_v13, %v1481_v30  ;;  %v1215_v22 = vmin.f32 %v1199_v42, 6.0  ;;  %v1484_v56 = vsel %vm450_vm0, %v1481_v30, %v1483_v44 }
  0xaa   : > { %v1527_v15 = vadd.f32 %v1482_v52, %v1382_v35  ;;  %v1606_v6 = vrot.slane %v1552_v0, 1  ;;  %v1528_v29 = vadd.f32 %v1484_v56, %v1383_v9  ;;  %v1608_v18 = vrot.slane %v1553_v47, 1 }
  0xab   : > { %v1677_v5 = vmul.f32 %v3854_v58, %v3910_v2  ;;  %v1678_v28 = vmul.f32 %v3854_v58, %v3927_v39  ;;  %v1227_v34 = vpack.c.bf16 %v1215_v22, %v1214_v46  ;;  %v1730_v32 = vrot.slane %v1676_v23, 1 }
  0xac   : > { %v1607_v31 = vsel %vm450_vm0, %v1605_v49, %v1606_v6  ;;  %v3958_v33 = vunpack.c.l.bf16 %v2839_v50  ;;  %v1609_v37 = vsel %vm450_vm0, %v1606_v6, %v1608_v18  ;;  %v1821_v63 = vmul.f32 %v3871_v1, %v3617_v61  ;;  %v3046_v49 = vld [vmem:[%s3254_s29 + $0x48] sm:$0xff]  }
  0xad   : > { %v1652_v7 = vadd.f32 %v1607_v31, %v1527_v15  ;;  %v1731_v48 = vrot.slane %v1677_v5, 1  ;;  %v1733_v51 = vrot.slane %v1678_v28, 1  ;;  %3113 = vmatmul.mubr.bf16.gmra.mrb[4].mxu0 %v1227_v34  ;;  %v1653_v12 = vadd.f32 %v1609_v37, %v1528_v29 }
  0xae   : > { %v1822_v8 = vmul.f32 %v3871_v1, %v3573_v45  ;;  %v1823_v10 = vmul.f32 %v3871_v1, %v3590_v3  ;;  %v1946_v43 = vmul.f32 %v3882_v11, %v3763_v25  ;;  %v1947_v59 = vmul.f32 %v3882_v11, %v3720_v17 }
  0xaf   : > { %v1732_v62 = vsel %vm450_vm0, %v1730_v32, %v1731_v48  ;;  %v1734_v13 = vsel %vm450_vm0, %v1731_v48, %v1733_v51  ;;  %v1875_v61 = vrot.slane %v1821_v63, 2  ;;  %v1948_v45 = vmul.f32 %v3882_v11, %v3737_v36  ;;  %v383_v32 = vld [vmem:[%s3254_s29 + $0x50] sm:$0x1] }
  0xb0   : > { %v1777_v35 = vadd.f32 %v1732_v62, %v1652_v7  ;;  %v1778_v9 = vadd.f32 %v1734_v13, %v1653_v12  ;;  %v1876_v30 = vrot.slane %v1822_v8, 2  ;;  %v1878_v42 = vrot.slane %v1823_v10, 2 }
  0xb1   : > { %v2000_v3 = vrot.slane %v1946_v43, 2  ;;  %v2001_v44 = vrot.slane %v1947_v59, 2  ;;  %v2071_v47 = vmul.f32 %v3896_v41, %v3958_v33  ;;  %v2072_v46 = vmul.f32 %v3896_v41, %v3910_v2 }
  0xb2   : > { %v1877_v0 = vsel %vm846_vm1, %v1875_v61, %v1876_v30  ;;  %v2073_v52 = vmul.f32 %v3896_v41, %v3927_v39  ;;  %v1879_v23 = vsel %vm846_vm1, %v1876_v30, %v1878_v42  ;;  %v2003_v56 = vrot.slane %v1948_v45, 2 }
  0xb3   : > { %v1922_v50 = vadd.f32 %v1877_v0, %v1777_v35  ;;  %v2002_v22 = vsel %vm846_vm1, %v2000_v3, %v2001_v44  ;;  %v1923_v15 = vadd.f32 %v1879_v23, %v1778_v9  ;;  %v2125_v6 = vrot.slane %v2071_v47, 2 }
  0xb4   : > { %v2126_v29 = vrot.slane %v2072_v46, 2  ;;  %v2128_v18 = vrot.slane %v2073_v52, 2  ;;  %v2004_v5 = vsel %vm846_vm1, %v2001_v44, %v2003_v56  ;;  %v3986_v34 = vunpack.c.l.bf16 %v3046_v49 }
  0xb5   : > { %v2047_v28 = vadd.f32 %v2002_v22, %v1922_v50  ;;  %v3988_v31 = vunpack.c.h.bf16 %v3046_v49  ;;  %v2048_v37 = vadd.f32 %v2004_v5, %v1923_v15  ;;  %v279_v51 = vmul.f32 %v3797_v60, %v3644_v53 }
  0xb6   : > { %v2127_v7 = vsel %vm846_vm1, %v2125_v6, %v2126_v29  ;;  %v2129_v48 = vsel %vm846_vm1, %v2126_v29, %v2128_v18  ;;  %v280_v63 = vmul.f32 %v3797_v60, %v3646_v55  ;;  %v316_v8 = vmul.f32 %v3809_v24, %v3790_v54 }
  0xb7   : > { %v2172_v12 = vadd.f32 %v2127_v7, %v2047_v28  ;;  %v317_v10 = vmul.f32 %v3809_v24, %v3792_v57  ;;  %v2173_v62 = vadd.f32 %v2129_v48, %v2048_v37  ;;  %v353_v13 = vmul.f32 %v3818_v16, %v3986_v34 }
  0xb8   : > { %v354_v43 = vmul.f32 %v3818_v16, %v3988_v31  ;;  %v4005_v59 = vunpack.c.l.bf16 %v383_v32  ;;  %v332_v9 = vadd.f32 %v316_v8, %v279_v51  ;;  %v414_v30 = vmul.f32 %v3829_v38, %v3644_v53  ;;  %v779_v32 = vld [vmem:[%s3254_s29 + $0x48] sm:$0xe] }
  0xb9   : > { %v2195_v35 = vadd.f32 %v3934_v27, %v2172_v12  ;;  %v333_v61 = vadd.f32 %v317_v10, %v280_v63  ;;  %v2196_v42 = vadd.f32 %v3934_v27, %v2173_v62  ;;  %v415_v45 = vmul.f32 %v3829_v38, %v3646_v55 }
  0xba   : > { %v416_v3 = vmul.f32 %v3829_v38, %v3663_v19  ;;  %v540_v44 = vmul.f32 %v3842_v40, %v3790_v54  ;;  %v369_v47 = vadd.f32 %v353_v13, %v332_v9  ;;  %v471_v52 = vrot.slane %v414_v30, 1 }
  0xbb   : > { %v2211_v0 = vmax.f32 %v2195_v35, 0.0  ;;  %v370_v46 = vadd.f32 %v354_v43, %v333_v61  ;;  %v2212_v49 = vmax.f32 %v2196_v42, 0.0  ;;  %v472_v23 = vrot.slane %v415_v45, 1 }
  0xbc   : > { %v474_v50 = vrot.slane %v416_v3, 1  ;;  %v541_v53 = vmul.f32 %v3842_v40, %v3792_v57  ;;  %v542_v56 = vmul.f32 %v3842_v40, %v3824_v21  ;;  %v596_v15 = vrot.slane %v540_v44, 1 }
  0xbd   : > { %v2227_v22 = vmin.f32 %v2211_v0, 6.0  ;;  %v665_v6 = vmul.f32 %v3854_v58, %v3986_v34  ;;  %v2228_v29 = vmin.f32 %v2212_v49, 6.0  ;;  %v473_v18 = vsel %vm450_vm0, %v471_v52, %v472_v23 }
  0xbe   : > { %v475_v5 = vsel %vm450_vm0, %v472_v23, %v474_v50  ;;  %v597_v28 = vrot.slane %v541_v53, 1  ;;  %v515_v37 = vadd.f32 %v473_v18, %v369_v47  ;;  %v599_v48 = vrot.slane %v542_v56, 1 }
  0xbf   : > { %v516_v7 = vadd.f32 %v475_v5, %v370_v46  ;;  %v666_v51 = vmul.f32 %v3854_v58, %v3988_v31  ;;  %v2240_v12 = vpack.c.bf16 %v2228_v29, %v2227_v22  ;;  %v667_v8 = vmul.f32 %v3854_v58, %v4005_v59 }
  0xc0   : > { %v598_v63 = vsel %vm450_vm0, %v596_v15, %v597_v28  ;;  %v721_v10 = vrot.slane %v665_v6, 1  ;;  %v600_v62 = vsel %vm450_vm0, %v597_v28, %v599_v48  ;;  %v4032_v35 = vunpack.c.l.bf16 %v779_v32  ;;  %v3051_v15 = vld [vmem:[%s3254_s29 + $0xa8] sm:$0xff]  }
  0xc1   : > { %v640_v13 = vadd.f32 %v598_v63, %v515_v37  ;;  %v722_v43 = vrot.slane %v666_v51, 1  ;;  %3129 = vmatmul.mubr.bf16.gmra.mrb[4].mxu1 %v2240_v12  ;;  %v641_v9 = vadd.f32 %v600_v62, %v516_v7  ;;  %v724_v61 = vrot.slane %v667_v8, 1 }
  0xc2   : > { %v810_v30 = vmul.f32 %v3871_v1, %v3690_v20  ;;  %v811_v42 = vmul.f32 %v3871_v1, %v3646_v55  ;;  %v812_v3 = vmul.f32 %v3871_v1, %v3663_v19  ;;  %v936_v44 = vmul.f32 %v3882_v11, %v3866_v14 }
  0xc3   : > { %v723_v45 = vsel %vm450_vm0, %v721_v10, %v722_v43  ;;  %v937_v0 = vmul.f32 %v3882_v11, %v3792_v57  ;;  %v725_v47 = vsel %vm450_vm0, %v722_v43, %v724_v61  ;;  %v938_v55 = vmul.f32 %v3882_v11, %v3824_v21  ;;  %v2827_v43 = vld [vmem:[%s3254_s29 + $0xb0] sm:$0x1] }
  0xc4   : > { %v765_v46 = vadd.f32 %v723_v45, %v640_v13  ;;  %v867_v52 = vrot.slane %v810_v30, 2  ;;  %v868_v20 = vrot.slane %v811_v42, 2  ;;  %v766_v49 = vadd.f32 %v725_v47, %v641_v9 }
  0xc5   : > { %v870_v23 = vrot.slane %v812_v3, 2  ;;  %v992_v50 = vrot.slane %v936_v44, 2  ;;  %v993_v19 = vrot.slane %v937_v0, 2  ;;  %v1061_v22 = vmul.f32 %v3896_v41, %v4032_v35 }
  0xc6   : > { %v869_v53 = vsel %vm846_vm1, %v867_v52, %v868_v20  ;;  %v1062_v56 = vmul.f32 %v3896_v41, %v3988_v31  ;;  %v995_v18 = vrot.slane %v938_v55, 2  ;;  %v1063_v5 = vmul.f32 %v3896_v41, %v4005_v59 }
  0xc7   : > { %v871_v6 = vsel %vm846_vm1, %v868_v20, %v870_v23  ;;  %v911_v29 = vadd.f32 %v869_v53, %v765_v46  ;;  %v994_v32 = vsel %vm846_vm1, %v992_v50, %v993_v19  ;;  %v1117_v37 = vrot.slane %v1061_v22, 2 }
  0xc8   : > { %v912_v28 = vadd.f32 %v871_v6, %v766_v49  ;;  %v1118_v7 = vrot.slane %v1062_v56, 2  ;;  %v996_v48 = vsel %vm846_vm1, %v993_v19, %v995_v18  ;;  %v1120_v12 = vrot.slane %v1063_v5, 2 }
  0xc9   : > { %v1036_v51 = vadd.f32 %v994_v32, %v911_v29  ;;  %v4059_v63 = vunpack.c.l.bf16 %v3051_v15  ;;  %v4062_v62 = vunpack.c.h.bf16 %v3051_v15  ;;  %v1294_v13 = vmul.f32 %v3797_v60, %v3717_v4 }
  0xca   : > { %v1037_v8 = vadd.f32 %v996_v48, %v912_v28  ;;  %v1119_v10 = vsel %vm846_vm1, %v1117_v37, %v1118_v7  ;;  %v1121_v9 = vsel %vm846_vm1, %v1118_v7, %v1120_v12  ;;  %v1295_v30 = vmul.f32 %v3797_v60, %v3720_v17  ;;  %v2840_v12 = vld [vmem:[%s3254_s29 + $0xa8] sm:$0xe] }
  0xcb   : > { %v1161_v61 = vadd.f32 %v1119_v10, %v1036_v51  ;;  %v1331_v42 = vmul.f32 %v3809_v24, %v3908_v26  ;;  %v1332_v3 = vmul.f32 %v3809_v24, %v3910_v2  ;;  %v1368_v44 = vmul.f32 %v3818_v16, %v4059_v63 }
  0xcc   : > { %v1162_v45 = vadd.f32 %v1121_v9, %v1037_v8  ;;  %v1369_v0 = vmul.f32 %v3818_v16, %v4062_v62  ;;  %v4079_v52 = vunpack.c.l.bf16 %v2827_v43  ;;  %v1429_v20 = vmul.f32 %v3829_v38, %v3717_v4 }
  0xcd   : > { %v1184_v47 = vadd.f32 %v3934_v27, %v1161_v61  ;;  %v1347_v46 = vadd.f32 %v1331_v42, %v1294_v13  ;;  %v1348_v23 = vadd.f32 %v1332_v3, %v1295_v30  ;;  %v1430_v55 = vmul.f32 %v3829_v38, %v3720_v17 }
  0xce   : > { %v1185_v49 = vadd.f32 %v3934_v27, %v1162_v45  ;;  %v1431_v50 = vmul.f32 %v3829_v38, %v3737_v36  ;;  %v1485_v22 = vrot.slane %v1429_v20, 1  ;;  %v1554_v56 = vmul.f32 %v3842_v40, %v3908_v26 }
  0xcf   : > { %v1200_v53 = vmax.f32 %v1184_v47, 0.0  ;;  %v1384_v19 = vadd.f32 %v1368_v44, %v1347_v46  ;;  %v1385_v6 = vadd.f32 %v1369_v0, %v1348_v23  ;;  %v1486_v29 = vrot.slane %v1430_v55, 1 }
  0xd0   : > { %v1201_v15 = vmax.f32 %v1185_v49, 0.0  ;;  %v1488_v4 = vrot.slane %v1431_v50, 1  ;;  %v1555_v5 = vmul.f32 %v3842_v40, %v3910_v2  ;;  %v1556_v28 = vmul.f32 %v3842_v40, %v3927_v39 }
  0xd1   : > { %v1216_v18 = vmin.f32 %v1200_v53, 6.0  ;;  %v1610_v32 = vrot.slane %v1554_v56, 1  ;;  %v1487_v7 = vsel %vm450_vm0, %v1485_v22, %v1486_v29  ;;  %v1679_v51 = vmul.f32 %v3854_v58, %v4059_v63 }
  0xd2   : > { %v1217_v37 = vmin.f32 %v1201_v15, 6.0  ;;  %v1489_v48 = vsel %vm450_vm0, %v1486_v29, %v1488_v4  ;;  %v1529_v8 = vadd.f32 %v1487_v7, %v1384_v19  ;;  %v1611_v13 = vrot.slane %v1555_v5, 1 }
  0xd3   : > { %v1530_v10 = vadd.f32 %v1489_v48, %v1385_v6  ;;  %v1613_v43 = vrot.slane %v1556_v28, 1  ;;  %v1680_v61 = vmul.f32 %v3854_v58, %v4062_v62  ;;  %v1681_v30 = vmul.f32 %v3854_v58, %v4079_v52  ;;  %v240_v28 = vld [vmem:[%s3254_s29 + $0x54] sm:$0xff]  }
  0xd4   : > { %v1228_v9 = vpack.c.bf16 %v1217_v37, %v1216_v18  ;;  %v1735_v42 = vrot.slane %v1679_v51, 1  ;;  %v1612_v45 = vsel %vm450_vm0, %v1610_v32, %v1611_v13  ;;  %v4105_v44 = vunpack.c.l.bf16 %v2840_v12 }
  0xd5   : > { %v1614_v3 = vsel %vm450_vm0, %v1611_v13, %v1613_v43  ;;  %v1824_v0 = vmul.f32 %v3871_v1, %v3763_v25  ;;  %v1654_v47 = vadd.f32 %v1612_v45, %v1529_v8  ;;  %v1736_v20 = vrot.slane %v1680_v61, 1 }
  0xd6   : > { %3116 = vmatprep.mubr.bf16.mxu0 %v1228_v9  ;;  %v1655_v46 = vadd.f32 %v1614_v3, %v1530_v10  ;;  %v1738_v49 = vrot.slane %v1681_v30, 1  ;;  %v1825_v23 = vmul.f32 %v3871_v1, %v3720_v17  ;;  %v1826_v55 = vmul.f32 %v3871_v1, %v3737_v36 }
  0xd7   : > { %v1880_v50 = vrot.slane %v1824_v0, 2  ;;  %v1949_v53 = vmul.f32 %v3882_v11, %v3958_v33  ;;  %v1737_v19 = vsel %vm450_vm0, %v1735_v42, %v1736_v20  ;;  %v1950_v22 = vmul.f32 %v3882_v11, %v3910_v2  ;;  %v384_v0 = vld [vmem:[%s3254_s29 + $0x5c] sm:$0x1] }
  0xd8   : > { %v1739_v25 = vsel %vm450_vm0, %v1736_v20, %v1738_v49  ;;  %v1951_v56 = vmul.f32 %v3882_v11, %v3927_v39  ;;  %v1779_v15 = vadd.f32 %v1737_v19, %v1654_v47  ;;  %v1881_v6 = vrot.slane %v1825_v23, 2 }
  0xd9   : > { %v1780_v17 = vadd.f32 %v1739_v25, %v1655_v46  ;;  %v1883_v29 = vrot.slane %v1826_v55, 2  ;;  %v2005_v4 = vrot.slane %v1949_v53, 2  ;;  %v2006_v36 = vrot.slane %v1950_v22, 2 }
  0xda   : > { %v2008_v18 = vrot.slane %v1951_v56, 2  ;;  %v2074_v5 = vmul.f32 %v3896_v41, %v4105_v44  ;;  %v1882_v32 = vsel %vm846_vm1, %v1880_v50, %v1881_v6  ;;  %v2075_v7 = vmul.f32 %v3896_v41, %v4062_v62 }
  0xdb   : > { %v1884_v37 = vsel %vm846_vm1, %v1881_v6, %v1883_v29  ;;  %v2076_v48 = vmul.f32 %v3896_v41, %v4079_v52  ;;  %v1924_v51 = vadd.f32 %v1882_v32, %v1779_v15  ;;  %v2007_v8 = vsel %vm846_vm1, %v2005_v4, %v2006_v36 }
  0xdc   : > { %v1925_v12 = vadd.f32 %v1884_v37, %v1780_v17  ;;  %v2009_v10 = vsel %vm846_vm1, %v2006_v36, %v2008_v18  ;;  %v2130_v13 = vrot.slane %v2074_v5, 2  ;;  %v2131_v43 = vrot.slane %v2075_v7, 2 }
  0xdd   : > { %v2133_v9 = vrot.slane %v2076_v48, 2  ;;  %v4132_v61 = vunpack.c.l.bf16 %v240_v28  ;;  %v2049_v30 = vadd.f32 %v2007_v8, %v1924_v51  ;;  %v4134_v45 = vunpack.c.h.bf16 %v240_v28 }
  0xde   : > { %v2050_v42 = vadd.f32 %v2009_v10, %v1925_v12  ;;  %v281_v3 = vmul.f32 %v3797_v60, %v3790_v54  ;;  %v2132_v47 = vsel %vm846_vm1, %v2130_v13, %v2131_v43  ;;  %v282_v20 = vmul.f32 %v3797_v60, %v3792_v57 }
  0xdf   : > { %v2134_v46 = vsel %vm846_vm1, %v2131_v43, %v2133_v9  ;;  %v318_v49 = vmul.f32 %v3809_v24, %v3986_v34  ;;  %v2174_v23 = vadd.f32 %v2132_v47, %v2049_v30  ;;  %v319_v50 = vmul.f32 %v3809_v24, %v3988_v31  ;;  %v780_v9 = vld [vmem:[%s3254_s29 + $0x54] sm:$0xe] }
  0xe0   : > { %v2175_v55 = vadd.f32 %v2134_v46, %v2050_v42  ;;  %v355_v53 = vmul.f32 %v3818_v16, %v4132_v61  ;;  %v356_v25 = vmul.f32 %v3818_v16, %v4134_v45  ;;  %v4151_v22 = vunpack.c.l.bf16 %v384_v0 }
  0xe1   : > { %v334_v19 = vadd.f32 %v318_v49, %v281_v3  ;;  %v417_v56 = vmul.f32 %v3829_v38, %v3790_v54  ;;  %v2197_v15 = vadd.f32 %v3934_v27, %v2174_v23  ;;  %v335_v6 = vadd.f32 %v319_v50, %v282_v20 }
  0xe2   : > { %v2198_v17 = vadd.f32 %v3934_v27, %v2175_v55  ;;  %v418_v29 = vmul.f32 %v3829_v38, %v3792_v57  ;;  %v419_v36 = vmul.f32 %v3829_v38, %v3824_v21  ;;  %v543_v5 = vmul.f32 %v3842_v40, %v3986_v34 }
  0xe3   : > { %v371_v4 = vadd.f32 %v355_v53, %v334_v19  ;;  %v476_v18 = vrot.slane %v417_v56, 1  ;;  %v2213_v28 = vmax.f32 %v2197_v15, 0.0  ;;  %v372_v54 = vadd.f32 %v356_v25, %v335_v6 }
  0xe4   : > { %v2214_v32 = vmax.f32 %v2198_v17, 0.0  ;;  %v477_v37 = vrot.slane %v418_v29, 1  ;;  %v479_v7 = vrot.slane %v419_v36, 1  ;;  %v544_v48 = vmul.f32 %v3842_v40, %v3988_v31 }
  0xe5   : > { %v545_v51 = vmul.f32 %v3842_v40, %v4005_v59  ;;  %v601_v12 = vrot.slane %v543_v5, 1  ;;  %v2229_v8 = vmin.f32 %v2213_v28, 6.0  ;;  %v668_v43 = vmul.f32 %v3854_v58, %v4132_v61 }
  0xe6   : > { %v2230_v10 = vmin.f32 %v2214_v32, 6.0  ;;  %v478_v13 = vsel %vm450_vm0, %v476_v18, %v477_v37  ;;  %v480_v30 = vsel %vm450_vm0, %v477_v37, %v479_v7  ;;  %v602_v3 = vrot.slane %v544_v48, 1 }
  0xe7   : > { %v517_v42 = vadd.f32 %v478_v13, %v371_v4  ;;  %v604_v0 = vrot.slane %v545_v51, 1  ;;  %v518_v46 = vadd.f32 %v480_v30, %v372_v54  ;;  %v669_v20 = vmul.f32 %v3854_v58, %v4134_v45  ;;  %v2812_v13 = vld [vmem:[%s3254_s29 + $0xb4] sm:$0xff]  }
  0xe8   : > { %v2241_v47 = vpack.c.bf16 %v2230_v10, %v2229_v8  ;;  %v670_v49 = vmul.f32 %v3854_v58, %v4151_v22  ;;  %v603_v23 = vsel %vm450_vm0, %v601_v12, %v602_v3  ;;  %v726_v50 = vrot.slane %v668_v43, 1 }
  0xe9   : > { %v605_v55 = vsel %vm450_vm0, %v602_v3, %v604_v0  ;;  %v4178_v53 = vunpack.c.l.bf16 %v780_v9  ;;  %v642_v19 = vadd.f32 %v603_v23, %v517_v42  ;;  %v727_v56 = vrot.slane %v669_v20, 1 }
  0xea   : > { %3132 = vmatprep.mubr.bf16.mxu1 %v2241_v47  ;;  %v643_v25 = vadd.f32 %v605_v55, %v518_v46  ;;  %v729_v15 = vrot.slane %v670_v49, 1  ;;  %v813_v17 = vmul.f32 %v3871_v1, %v3866_v14  ;;  %v814_v6 = vmul.f32 %v3871_v1, %v3792_v57 }
  0xeb   : > { %v815_v29 = vmul.f32 %v3871_v1, %v3824_v21  ;;  %v939_v4 = vmul.f32 %v3882_v11, %v4032_v35  ;;  %v728_v36 = vsel %vm450_vm0, %v726_v50, %v727_v56  ;;  %v940_v5 = vmul.f32 %v3882_v11, %v3988_v31  ;;  %v2828_v50 = vld [vmem:[%s3254_s29 + $0xbc] sm:$0x1] }
  0xec   : > { %v730_v18 = vsel %vm450_vm0, %v727_v56, %v729_v15  ;;  %v941_v14 = vmul.f32 %v3882_v11, %v4005_v59  ;;  %v767_v28 = vadd.f32 %v728_v36, %v642_v19  ;;  %v872_v57 = vrot.slane %v813_v17, 2 }
  0xed   : > { %v768_v32 = vadd.f32 %v730_v18, %v643_v25  ;;  %v873_v54 = vrot.slane %v814_v6, 2  ;;  %v875_v37 = vrot.slane %v815_v29, 2  ;;  %v997_v21 = vrot.slane %v939_v4, 2 }
  0xee   : > { %v998_v7 = vrot.slane %v940_v5, 2  ;;  %v1000_v48 = vrot.slane %v941_v14, 2  ;;  %v1064_v12 = vmul.f32 %v3896_v41, %v4178_v53  ;;  %v1065_v8 = vmul.f32 %v3896_v41, %v4134_v45 }
  0xef   : > { %v874_v51 = vsel %vm846_vm1, %v872_v57, %v873_v54  ;;  %v1066_v10 = vmul.f32 %v3896_v41, %v4151_v22  ;;  %v876_v43 = vsel %vm846_vm1, %v873_v54, %v875_v37  ;;  %v4205_v49 = vunpack.c.l.bf16 %v2812_v13 }
  0xf0   : > { %v913_v9 = vadd.f32 %v874_v51, %v767_v28  ;;  %v999_v30 = vsel %vm846_vm1, %v997_v21, %v998_v7  ;;  %v1001_v42 = vsel %vm846_vm1, %v998_v7, %v1000_v48  ;;  %v914_v3 = vadd.f32 %v876_v43, %v768_v32 }
  0xf1   : > { %v1122_v0 = vrot.slane %v1064_v12, 2  ;;  %v1123_v47 = vrot.slane %v1065_v8, 2  ;;  %v1125_v46 = vrot.slane %v1066_v10, 2  ;;  %v4207_v23 = vunpack.c.h.bf16 %v2812_v13 }
  0xf2   : > { %v1038_v20 = vadd.f32 %v999_v30, %v913_v9  ;;  %v1296_v55 = vmul.f32 %v3797_v60, %v3908_v26  ;;  %v1039_v19 = vadd.f32 %v1001_v42, %v914_v3  ;;  %v1297_v15 = vmul.f32 %v3797_v60, %v3910_v2  ;;  %v2841_v3 = vld [vmem:[%s3254_s29 + $0xb4] sm:$0xe] }
  0xf3   : > { %v1124_v25 = vsel %vm846_vm1, %v1122_v0, %v1123_v47  ;;  %v1126_v56 = vsel %vm846_vm1, %v1123_v47, %v1125_v46  ;;  %v1333_v6 = vmul.f32 %v3809_v24, %v4059_v63  ;;  %v1334_v29 = vmul.f32 %v3809_v24, %v4062_v62 }
  0xf4   : > { %v1163_v17 = vadd.f32 %v1124_v25, %v1038_v20  ;;  %v1370_v4 = vmul.f32 %v3818_v16, %v4205_v49  ;;  %v1164_v36 = vadd.f32 %v1126_v56, %v1039_v19  ;;  %v1371_v18 = vmul.f32 %v3818_v16, %v4207_v23 }
  0xf5   : > { %v4224_v5 = vunpack.c.l.bf16 %v2828_v50  ;;  %v1432_v14 = vmul.f32 %v3829_v38, %v3908_v26  ;;  %v1349_v28 = vadd.f32 %v1333_v6, %v1296_v55  ;;  %v1350_v32 = vadd.f32 %v1334_v29, %v1297_v15 }
  0xf6   : > { %v1186_v60 = vadd.f32 %v3934_v27, %v1163_v17  ;;  %v1433_v57 = vmul.f32 %v3829_v38, %v3910_v2  ;;  %v1187_v54 = vadd.f32 %v3934_v27, %v1164_v36  ;;  %v1434_v37 = vmul.f32 %v3829_v38, %v3927_v39 }
  0xf7   : > { %v1490_v21 = vrot.slane %v1432_v14, 1  ;;  %v1557_v7 = vmul.f32 %v3842_v40, %v4059_v63  ;;  %v1386_v51 = vadd.f32 %v1370_v4, %v1349_v28  ;;  %v1387_v26 = vadd.f32 %v1371_v18, %v1350_v32 }
  0xf8   : > { %v1202_v48 = vmax.f32 %v1186_v60, 0.0  ;;  %v1491_v12 = vrot.slane %v1433_v57, 1  ;;  %v1203_v8 = vmax.f32 %v1187_v54, 0.0  ;;  %v1493_v10 = vrot.slane %v1434_v37, 1 }
  0xf9   : > { %v1558_v13 = vmul.f32 %v3842_v40, %v4062_v62  ;;  %v1559_v43 = vmul.f32 %v3842_v40, %v4079_v52  ;;  %v1615_v38 = vrot.slane %v1557_v7, 1  ;;  %v1682_v42 = vmul.f32 %v3854_v58, %v4205_v49 }
  0xfa   : > { %v1218_v9 = vmin.f32 %v1202_v48, 6.0  ;;  %v1492_v30 = vsel %vm450_vm0, %v1490_v21, %v1491_v12  ;;  %v1219_v0 = vmin.f32 %v1203_v8, 6.0  ;;  %v1494_v47 = vsel %vm450_vm0, %v1491_v12, %v1493_v10 }
  0xfb   : > { %v1531_v46 = vadd.f32 %v1492_v30, %v1386_v51  ;;  %v1616_v20 = vrot.slane %v1558_v13, 1  ;;  %v1532_v55 = vadd.f32 %v1494_v47, %v1387_v26  ;;  %v1618_v50 = vrot.slane %v1559_v43, 1 }
  0xfc   : > { %v1683_v19 = vmul.f32 %v3854_v58, %v4207_v23  ;;  %v1684_v25 = vmul.f32 %v3854_v58, %v4224_v5  ;;  %v1229_v56 = vpack.c.bf16 %v1219_v0, %v1218_v9  ;;  %v1740_v17 = vrot.slane %v1682_v42, 1  ;;  %v3047_v9 = vld [vmem:[%s3254_s29 + $0x60] sm:$0xff]  }
  0xfd   : > { %v1617_v15 = vsel %vm450_vm0, %v1615_v38, %v1616_v20  ;;  %v4250_v6 = vunpack.c.l.bf16 %v2841_v3  ;;  %v1619_v29 = vsel %vm450_vm0, %v1616_v20, %v1618_v50  ;;  %v1827_v60 = vmul.f32 %v3871_v1, %v3958_v33 }
  0xfe   : > { %v1656_v4 = vadd.f32 %v1617_v15, %v1531_v46  ;;  %v1741_v36 = vrot.slane %v1683_v19, 1  ;;  %v1743_v18 = vrot.slane %v1684_v25, 1  ;;  %3117 = vmatmul.mubr.bf16.gmra.mrb[8].mxu0 %v1229_v56  ;;  %v1657_v14 = vadd.f32 %v1619_v29, %v1532_v55  ;;  %v385_v56 = vld [vmem:[%s3254_s29 + $0x68] sm:$0x1] }
  0xff   : > { %v1828_v28 = vmul.f32 %v3871_v1, %v3910_v2  ;;  %v1829_v32 = vmul.f32 %v3871_v1, %v3927_v39  ;;  %v1952_v37 = vmul.f32 %v3882_v11, %v4105_v44  ;;  %v1953_v21 = vmul.f32 %v3882_v11, %v4062_v62 }
 0x100   : > { %v1742_v57 = vsel %vm450_vm0, %v1740_v17, %v1741_v36  ;;  %v1744_v54 = vsel %vm450_vm0, %v1741_v36, %v1743_v18  ;;  %v1885_v33 = vrot.slane %v1827_v60, 2  ;;  %v1954_v2 = vmul.f32 %v3882_v11, %v4079_v52 }
 0x101   : > { %v1781_v7 = vadd.f32 %v1742_v57, %v1656_v4  ;;  %v1782_v48 = vadd.f32 %v1744_v54, %v1657_v14  ;;  %v1886_v51 = vrot.slane %v1828_v28, 2  ;;  %v1888_v26 = vrot.slane %v1829_v32, 2  ;;  %v4288_v4 = vld [vmem:[%s4700_s1] ss:$0 sm:$0xff]  ;;  %v4299_v28 = vld [vmem:[%s4700_s1 + $0x3] ss:$0 sm:$0xff] }
 0x102   : > { %v2010_v39 = vrot.slane %v1952_v37, 2  ;;  %v2011_v12 = vrot.slane %v1953_v21, 2  ;;  %v2077_v10 = vmul.f32 %v3896_v41, %v4250_v6  ;;  %v2078_v13 = vmul.f32 %v3896_v41, %v4207_v23 }
 0x103   : > { %v1887_v8 = vsel %vm846_vm1, %v1885_v33, %v1886_v51  ;;  %v2079_v43 = vmul.f32 %v3896_v41, %v4224_v5  ;;  %v1889_v30 = vsel %vm846_vm1, %v1886_v51, %v1888_v26  ;;  %v2013_v3 = vrot.slane %v1954_v2, 2  ;;  %v4313_v33 = vld [vmem:[%s4700_s1 + $0x1] ss:$0 sm:$0xff] }
 0x104   : > { %v1926_v38 = vadd.f32 %v1887_v8, %v1781_v7  ;;  %v2012_v42 = vsel %vm846_vm1, %v2010_v39, %v2011_v12  ;;  %v1927_v0 = vadd.f32 %v1889_v30, %v1782_v48  ;;  %v2135_v47 = vrot.slane %v2077_v10, 2 }
 0x105   : > { %v2136_v46 = vrot.slane %v2078_v13, 2  ;;  %v2138_v20 = vrot.slane %v2079_v43, 2  ;;  %v2014_v55 = vsel %vm846_vm1, %v2011_v12, %v2013_v3  ;;  %v4278_v19 = vunpack.c.l.bf16 %v3047_v9 }
 0x106   : > { %v2051_v50 = vadd.f32 %v2012_v42, %v1926_v38  ;;  %v4280_v25 = vunpack.c.h.bf16 %v3047_v9  ;;  %v2052_v15 = vadd.f32 %v2014_v55, %v1927_v0  ;;  %v283_v36 = vmul.f32 %v4288_v4, %v3986_v34 }
 0x107   : > { %v2137_v17 = vsel %vm846_vm1, %v2135_v47, %v2136_v46  ;;  %v2139_v29 = vsel %vm846_vm1, %v2136_v46, %v2138_v20  ;;  %v284_v14 = vmul.f32 %v4288_v4, %v3988_v31  ;;  %v320_v60 = vmul.f32 %v3809_v24, %v4132_v61 }
 0x108   : > { %v2176_v18 = vadd.f32 %v2137_v17, %v2051_v50  ;;  %v321_v32 = vmul.f32 %v4299_v28, %v4134_v45  ;;  %v2177_v57 = vadd.f32 %v2139_v29, %v2052_v15  ;;  %v357_v54 = vmul.f32 %v3818_v16, %v4278_v19  ;;  %v4338_v50 = vld [vmem:[%s3254_s29 + $0x60] sm:$0xe]  ;;  %v4343_v29 = vld [vmem:[%s4700_s1 + $0x7] ss:$0 sm:$0xff] }
 0x109   : > { %v358_v37 = vmul.f32 %v3818_v16, %v4280_v25  ;;  %v4307_v21 = vunpack.c.l.bf16 %v385_v56  ;;  %v336_v24 = vadd.f32 %v320_v60, %v283_v36  ;;  %v420_v51 = vmul.f32 %v4313_v33, %v3986_v34  ;;  %v4327_v34 = vld [vmem:[%s4700_s1 + $0x4] ss:$0 sm:$0xff] }
 0x10a   : > { %v2199_v7 = vadd.f32 %v3934_v27, %v2176_v18  ;;  %v337_v48 = vadd.f32 %v321_v32, %v284_v14  ;;  %v2200_v26 = vadd.f32 %v3934_v27, %v2177_v57  ;;  %v421_v2 = vmul.f32 %v4313_v33, %v3988_v31 }
 0x10b   : > { %v422_v16 = vmul.f32 %v4313_v33, %v4005_v59  ;;  %v546_v39 = vmul.f32 %v3842_v40, %v4132_v61  ;;  %v373_v8 = vadd.f32 %v357_v54, %v336_v24  ;;  %v481_v13 = vrot.slane %v420_v51, 1 }
 0x10c   : > { %v2215_v12 = vmax.f32 %v2199_v7, 0.0  ;;  %v374_v10 = vadd.f32 %v358_v37, %v337_v48  ;;  %v2216_v43 = vmax.f32 %v2200_v26, 0.0  ;;  %v482_v9 = vrot.slane %v421_v2, 1  ;;  %v4360_v2 = vld [vmem:[%s4700_s1 + $0x2] ss:$0 sm:$0xff] }
 0x10d   : > { %v484_v30 = vrot.slane %v422_v16, 1  ;;  %v547_v38 = vmul.f32 %v4327_v34, %v4134_v45  ;;  %v548_v40 = vmul.f32 %v4327_v34, %v4151_v22  ;;  %v606_v3 = vrot.slane %v546_v39, 1 }
 0x10e   : > { %v2231_v42 = vmin.f32 %v2215_v12, 6.0  ;;  %v671_v0 = vmul.f32 %v3854_v58, %v4278_v19  ;;  %v2232_v47 = vmin.f32 %v2216_v43, 6.0  ;;  %v483_v46 = vsel %vm450_vm0, %v481_v13, %v482_v9 }
 0x10f   : > { %v485_v20 = vsel %vm450_vm0, %v482_v9, %v484_v30  ;;  %v607_v55 = vrot.slane %v547_v38, 1  ;;  %v519_v56 = vadd.f32 %v483_v46, %v373_v8  ;;  %v609_v17 = vrot.slane %v548_v40, 1  ;;  %v3052_v40 = vld [vmem:[%s3254_s29 + $0xc0] sm:$0xff]   ;;  %v4387_v46 = vld [vmem:[%s4700_s1 + $0x8] ss:$0 sm:$0xff] }
 0x110   : > { %v520_v15 = vadd.f32 %v485_v20, %v374_v10  ;;  %v672_v36 = vmul.f32 %v4343_v29, %v4280_v25  ;;  %v2242_v58 = vpack.c.bf16 %v2232_v47, %v2231_v42  ;;  %v673_v14 = vmul.f32 %v4343_v29, %v4307_v21 }
 0x111   : > { %v608_v18 = vsel %vm450_vm0, %v606_v3, %v607_v55  ;;  %v731_v60 = vrot.slane %v671_v0, 1  ;;  %v610_v32 = vsel %vm450_vm0, %v607_v55, %v609_v17  ;;  %v791_v37 = vunpack.c.l.bf16 %v4338_v50 }
 0x112   : > { %v644_v57 = vadd.f32 %v608_v18, %v519_v56  ;;  %v732_v54 = vrot.slane %v672_v36, 1  ;;  %3133 = vmatmul.mubr.bf16.gmra.mrb[8].mxu1 %v2242_v58  ;;  %v645_v7 = vadd.f32 %v610_v32, %v520_v15  ;;  %v734_v24 = vrot.slane %v673_v14, 1 }
 0x113   : > { %v816_v48 = vmul.f32 %v3871_v1, %v4032_v35  ;;  %v817_v51 = vmul.f32 %v3871_v1, %v3988_v31  ;;  %v818_v16 = vmul.f32 %v4360_v2, %v4005_v59  ;;  %v942_v39 = vmul.f32 %v3882_v11, %v4178_v53  ;;  %v4369_v35 = vld [vmem:[%s4700_s1 + $0x5] ss:$0 sm:$0xff] }
 0x114   : > { %v733_v26 = vsel %vm450_vm0, %v731_v60, %v732_v54  ;;  %v943_v1 = vmul.f32 %v4369_v35, %v4134_v45  ;;  %v735_v31 = vsel %vm450_vm0, %v732_v54, %v734_v24  ;;  %v944_v59 = vmul.f32 %v4369_v35, %v4151_v22  ;;  %v2829_v54 = vld [vmem:[%s3254_s29 + $0xc8] sm:$0x1] }
 0x115   : > { %v769_v12 = vadd.f32 %v733_v26, %v644_v57  ;;  %v877_v8 = vrot.slane %v816_v48, 2  ;;  %v878_v10 = vrot.slane %v817_v51, 2  ;;  %v770_v13 = vadd.f32 %v735_v31, %v645_v7 }
 0x116   : > { %v880_v43 = vrot.slane %v818_v16, 2  ;;  %v1002_v9 = vrot.slane %v942_v39, 2  ;;  %v1003_v30 = vrot.slane %v943_v1, 2  ;;  %v1067_v38 = vmul.f32 %v3896_v41, %v791_v37  ;;  %v4411_v39 = vld [vmem:[%s4700_s1 + $0x6] ss:$0 sm:$0xff] }
 0x117   : > { %v879_v11 = vsel %vm846_vm1, %v877_v8, %v878_v10  ;;  %v1068_v42 = vmul.f32 %v3896_v41, %v4280_v25  ;;  %v1005_v47 = vrot.slane %v944_v59, 2  ;;  %v1069_v20 = vmul.f32 %v4387_v46, %v4307_v21 }
 0x118   : > { %v881_v3 = vsel %vm846_vm1, %v878_v10, %v880_v43  ;;  %v915_v0 = vadd.f32 %v879_v11, %v769_v12  ;;  %v1004_v56 = vsel %vm846_vm1, %v1002_v9, %v1003_v30  ;;  %v1127_v15 = vrot.slane %v1067_v38, 2  ;;  %v4425_v43 = vld [vmem:[%s4701_s2] ss:$0 sm:$0xff] }
 0x119   : > { %v916_v55 = vadd.f32 %v881_v3, %v770_v13  ;;  %v1128_v17 = vrot.slane %v1068_v42, 2  ;;  %v1006_v41 = vsel %vm846_vm1, %v1003_v30, %v1005_v47  ;;  %v1130_v58 = vrot.slane %v1069_v20, 2 }
 0x11a   : > { %v1040_v36 = vadd.f32 %v1004_v56, %v915_v0  ;;  %v4393_v18 = vunpack.c.l.bf16 %v3052_v40  ;;  %v4396_v32 = vunpack.c.h.bf16 %v3052_v40  ;;  %v1298_v57 = vmul.f32 %v4288_v4, %v4059_v63 }
 0x11b   : > { %v1041_v14 = vadd.f32 %v1006_v41, %v916_v55  ;;  %v1129_v60 = vsel %vm846_vm1, %v1127_v15, %v1128_v17  ;;  %v1131_v7 = vsel %vm846_vm1, %v1128_v17, %v1130_v58  ;;  %v1299_v48 = vmul.f32 %v4288_v4, %v4062_v62 }
 0x11c   : > { %v1165_v24 = vadd.f32 %v1129_v60, %v1040_v36  ;;  %v1335_v51 = vmul.f32 %v4299_v28, %v4205_v49  ;;  %v1336_v16 = vmul.f32 %v4299_v28, %v4207_v23  ;;  %v1372_v1 = vmul.f32 %v4411_v39, %v4393_v18 }
 0x11d   : > { %v1166_v26 = vadd.f32 %v1131_v7, %v1041_v14  ;;  %v1373_v31 = vmul.f32 %v4411_v39, %v4396_v32  ;;  %v4418_v10 = vunpack.c.l.bf16 %v2829_v54  ;;  %v1435_v13 = vmul.f32 %v4313_v33, %v4059_v63  ;;  %v4443_v14 = vld [vmem:[%s3254_s29 + $0xc0] sm:$0xe] }
 0x11e   : > { %v1188_v12 = vadd.f32 %v3934_v27, %v1165_v24  ;;  %v1351_v8 = vadd.f32 %v1335_v51, %v1298_v57  ;;  %v1352_v9 = vadd.f32 %v1336_v16, %v1299_v48  ;;  %v1436_v11 = vmul.f32 %v4313_v33, %v4062_v62 }
 0x11f   : > { %v1189_v59 = vadd.f32 %v4425_v43, %v1166_v26  ;;  %v1437_v27 = vmul.f32 %v4313_v33, %v4079_v52  ;;  %v1495_v42 = vrot.slane %v1435_v13, 1  ;;  %v1560_v63 = vmul.f32 %v4327_v34, %v4205_v49 }
 0x120   : > { %v1204_v30 = vmax.f32 %v1188_v12, 0.0  ;;  %v1388_v38 = vadd.f32 %v1372_v1, %v1351_v8  ;;  %v1389_v3 = vadd.f32 %v1373_v31, %v1352_v9  ;;  %v1496_v0 = vrot.slane %v1436_v11, 1 }
 0x121   : > { %v1205_v40 = vmax.f32 %v1189_v59, 0.0  ;;  %v1498_v47 = vrot.slane %v1437_v27, 1  ;;  %v1561_v55 = vmul.f32 %v4327_v34, %v4207_v23  ;;  %v1562_v56 = vmul.f32 %v4327_v34, %v4224_v5 }
 0x122   : > { %v1220_v20 = vmin.f32 %v1204_v30, 6.0  ;;  %v1620_v15 = vrot.slane %v1560_v63, 1  ;;  %v1497_v41 = vsel %vm450_vm0, %v1495_v42, %v1496_v0  ;;  %v1685_v58 = vmul.f32 %v4343_v29, %v4393_v18 }
 0x123   : > { %v1221_v17 = vmin.f32 %v1205_v40, 6.0  ;;  %v1499_v36 = vsel %vm450_vm0, %v1496_v0, %v1498_v47  ;;  %v1533_v60 = vadd.f32 %v1497_v41, %v1388_v38  ;;  %v1621_v54 = vrot.slane %v1561_v55, 1 }
 0x124   : > { %v1534_v57 = vadd.f32 %v1499_v36, %v1389_v3  ;;  %v1623_v7 = vrot.slane %v1562_v56, 1  ;;  %v1686_v48 = vmul.f32 %v4343_v29, %v4396_v32  ;;  %v1687_v51 = vmul.f32 %v4343_v29, %v4418_v10 }
 0x125   : > { %v1230_v24 = vpack.c.bf16 %v1221_v17, %v1220_v20  ;;  %v1745_v26 = vrot.slane %v1685_v58, 1  ;;  %v1622_v16 = vsel %vm450_vm0, %v1620_v15, %v1621_v54  ;;  %v1805_v31 = vunpack.c.l.bf16 %v4443_v14  ;;  %v244_v15 = vld [vmem:[%s3254_s29 + $0x6c] sm:$0xff]  }
 0x126   : > { %v1624_v1 = vsel %vm450_vm0, %v1621_v54, %v1623_v7  ;;  %v1830_v12 = vmul.f32 %v4360_v2, %v4105_v44  ;;  %v1658_v8 = vadd.f32 %v1622_v16, %v1533_v60  ;;  %v1746_v59 = vrot.slane %v1686_v48, 1 }
 0x127   : > { %3120 = vmatprep.mubr.bf16.mxu0 %v1230_v24  ;;  %v1659_v13 = vadd.f32 %v1624_v1, %v1534_v57  ;;  %v1748_v9 = vrot.slane %v1687_v51, 1  ;;  %v1831_v11 = vmul.f32 %v4360_v2, %v4062_v62  ;;  %v1832_v27 = vmul.f32 %v4360_v2, %v4079_v52 }
 0x128   : > { %v1890_v30 = vrot.slane %v1830_v12, 2  ;;  %v1955_v38 = vmul.f32 %v4369_v35, %v4250_v6  ;;  %v1747_v42 = vsel %vm450_vm0, %v1745_v26, %v1746_v59  ;;  %v1956_v63 = vmul.f32 %v4369_v35, %v4207_v23 }
 0x129   : > { %v1749_v44 = vsel %vm450_vm0, %v1746_v59, %v1748_v9  ;;  %v1957_v40 = vmul.f32 %v4369_v35, %v4224_v5  ;;  %v1783_v3 = vadd.f32 %v1747_v42, %v1658_v8  ;;  %v1891_v0 = vrot.slane %v1831_v11, 2 }
 0x12a   : > { %v1784_v62 = vadd.f32 %v1749_v44, %v1659_v13  ;;  %v1893_v47 = vrot.slane %v1832_v27, 2  ;;  %v2015_v20 = vrot.slane %v1955_v38, 2  ;;  %v2016_v52 = vrot.slane %v1956_v63, 2  ;;  %v4483_v13 = vld [vmem:[%s3254_s29 + $0x74] sm:$0x1] }
 0x12b   : > { %v2018_v55 = vrot.slane %v1957_v40, 2  ;;  %v2080_v56 = vmul.f32 %v4387_v46, %v1805_v31  ;;  %v1892_v17 = vsel %vm846_vm1, %v1890_v30, %v1891_v0  ;;  %v2081_v36 = vmul.f32 %v4387_v46, %v4396_v32 }
 0x12c   : > { %v1894_v41 = vsel %vm846_vm1, %v1891_v0, %v1893_v47  ;;  %v2082_v58 = vmul.f32 %v4387_v46, %v4418_v10  ;;  %v1928_v60 = vadd.f32 %v1892_v17, %v1783_v3  ;;  %v2017_v54 = vsel %vm846_vm1, %v2015_v20, %v2016_v52 }
 0x12d   : > { %v1929_v57 = vadd.f32 %v1894_v41, %v1784_v62  ;;  %v2019_v7 = vsel %vm846_vm1, %v2016_v52, %v2018_v55  ;;  %v2140_v24 = vrot.slane %v2080_v56, 2  ;;  %v2141_v48 = vrot.slane %v2081_v36, 2 }
 0x12e   : > { %v2143_v51 = vrot.slane %v2082_v58, 2  ;;  %v264_v26 = vunpack.c.l.bf16 %v244_v15  ;;  %v2053_v16 = vadd.f32 %v2017_v54, %v1928_v60  ;;  %v4478_v12 = vunpack.c.h.bf16 %v244_v15 }
 0x12f   : > { %v2054_v1 = vadd.f32 %v2019_v7, %v1929_v57  ;;  %v285_v8 = vmul.f32 %v4288_v4, %v4132_v61  ;;  %v2142_v59 = vsel %vm846_vm1, %v2140_v24, %v2141_v48  ;;  %v286_v11 = vmul.f32 %v4288_v4, %v4134_v45 }
 0x130   : > { %v2144_v9 = vsel %vm846_vm1, %v2141_v48, %v2143_v51  ;;  %v322_v27 = vmul.f32 %v4299_v28, %v4278_v19  ;;  %v4491_v30 = vpop.f32.mrb[0].mxu0  ;;  %v2178_v38 = vadd.f32 %v2142_v59, %v2053_v16  ;;  %v323_v44 = vmul.f32 %v4299_v28, %v4280_v25 }
 0x131   : > { %v2179_v42 = vadd.f32 %v2144_v9, %v2054_v1  ;;  %v359_v63 = vmul.f32 %v4411_v39, %v264_v26  ;;  %v4496_v40 = vpop.f32.mrb[1].mxu0  ;;  %v360_v62 = vmul.f32 %v4411_v39, %v4478_v12  ;;  %v396_v0 = vunpack.c.l.bf16 %v4483_v13  ;;  %v782_v9 = vld [vmem:[%s3254_s29 + $0x6c] sm:$0xe] }
 0x132   : > { %v338_v3 = vadd.f32 %v322_v27, %v285_v8  ;;  %v423_v47 = vmul.f32 %v4313_v33, %v4132_v61  ;;  %v4503_v20 = vpop.f32.mrb[2].mxu0  ;;  %v2201_v52 = vadd.f32 %v4425_v43, %v2178_v38  ;;  %v339_v56 = vadd.f32 %v323_v44, %v286_v11 }
 0x133   : > { %v2202_v55 = vadd.f32 %v4425_v43, %v2179_v42  ;;  %v424_v15 = vmul.f32 %v4313_v33, %v4134_v45  ;;  %v4509_v17 = vpop.f32.mrb[3].mxu0  ;;  %v425_v36 = vmul.f32 %v4313_v33, %v4151_v22  ;;  %v549_v61 = vmul.f32 %v4327_v34, %v4278_v19 }
 0x134   : > { %v375_v41 = vadd.f32 %v359_v63, %v338_v3  ;;  %v486_v58 = vrot.slane %v423_v47, 1  ;;  %v2217_v60 = vmax.f32 %v2201_v52, 0.0  ;;  %v376_v54 = vadd.f32 %v360_v62, %v339_v56 }
 0x135   : > { %v2218_v57 = vmax.f32 %v2202_v55, 0.0  ;;  %v487_v7 = vrot.slane %v424_v15, 1  ;;  %v489_v24 = vrot.slane %v425_v36, 1  ;;  %v550_v48 = vmul.f32 %v4327_v34, %v4280_v25 }
 0x136   : > { %v551_v51 = vmul.f32 %v4327_v34, %v4307_v21  ;;  %v611_v16 = vrot.slane %v549_v61, 1  ;;  %v2233_v1 = vmin.f32 %v2217_v60, 6.0  ;;  %v674_v59 = vmul.f32 %v4343_v29, %v264_v26 }
 0x137   : > { %v2234_v8 = vmin.f32 %v2218_v57, 6.0  ;;  %v488_v13 = vsel %vm450_vm0, %v486_v58, %v487_v7  ;;  %v490_v19 = vsel %vm450_vm0, %v487_v7, %v489_v24  ;;  %v612_v27 = vrot.slane %v550_v48, 1 }
 0x138   : > { %v521_v11 = vadd.f32 %v488_v13, %v375_v41  ;;  %v614_v38 = vrot.slane %v551_v51, 1  ;;  %v522_v44 = vadd.f32 %v490_v19, %v376_v54  ;;  %v675_v63 = vmul.f32 %v4343_v29, %v4478_v12 }
 0x139   : > { %v2243_v42 = vpack.c.bf16 %v2234_v8, %v2233_v1  ;;  %v676_v3 = vmul.f32 %v4343_v29, %v396_v0  ;;  %v613_v62 = vsel %vm450_vm0, %v611_v16, %v612_v27  ;;  %v736_v52 = vrot.slane %v674_v59, 1  ;;  %v2816_v59 = vld [vmem:[%s3254_s29 + $0xcc] sm:$0xff]  }
 0x13a   : > { %v615_v47 = vsel %vm450_vm0, %v612_v27, %v614_v38  ;;  %v792_v55 = vunpack.c.l.bf16 %v782_v9  ;;  %v646_v26 = vadd.f32 %v613_v62, %v521_v11  ;;  %v737_v15 = vrot.slane %v675_v63, 1 }
 0x13b   : > { %3136 = vmatprep.mubr.bf16.mxu1 %v2243_v42  ;;  %v647_v56 = vadd.f32 %v615_v47, %v522_v44  ;;  %v739_v41 = vrot.slane %v676_v3, 1  ;;  %v819_v36 = vmul.f32 %v4360_v2, %v4178_v53  ;;  %v820_v58 = vmul.f32 %v4360_v2, %v4134_v45 }
 0x13c   : > { %v821_v61 = vmul.f32 %v4360_v2, %v4151_v22  ;;  %v945_v60 = vmul.f32 %v4369_v35, %v791_v37  ;;  %v738_v57 = vsel %vm450_vm0, %v736_v52, %v737_v15  ;;  %v946_v7 = vmul.f32 %v4369_v35, %v4280_v25 }
 0x13d   : > { %v740_v54 = vsel %vm450_vm0, %v737_v15, %v739_v41  ;;  %v947_v53 = vmul.f32 %v4369_v35, %v4307_v21  ;;  %v771_v24 = vadd.f32 %v738_v57, %v646_v26  ;;  %v882_v48 = vrot.slane %v819_v36, 2 }
 0x13e   : > { %v772_v45 = vadd.f32 %v740_v54, %v647_v56  ;;  %v883_v51 = vrot.slane %v820_v58, 2  ;;  %v885_v22 = vrot.slane %v821_v61, 2  ;;  %v1007_v16 = vrot.slane %v945_v60, 2 }
 0x13f   : > { %v1008_v50 = vrot.slane %v946_v7, 2  ;;  %v1010_v1 = vrot.slane %v947_v53, 2  ;;  %v1070_v8 = vmul.f32 %v4387_v46, %v792_v55  ;;  %v1071_v13 = vmul.f32 %v4387_v46, %v4478_v12 }
 0x140   : > { %v884_v37 = vsel %vm846_vm1, %v882_v48, %v883_v51  ;;  %v1072_v25 = vmul.f32 %v4387_v46, %v396_v0  ;;  %v886_v21 = vsel %vm846_vm1, %v883_v51, %v885_v22  ;;  %v1279_v3 = vunpack.c.l.bf16 %v2816_v59  ;;  %v4557_v0 = vld [vmem:[%s3254_s29 + $0xd4] sm:$0x1] }
 0x141   : > { %v917_v9 = vadd.f32 %v884_v37, %v771_v24  ;;  %v1009_v19 = vsel %vm846_vm1, %v1007_v16, %v1008_v50  ;;  %v1011_v11 = vsel %vm846_vm1, %v1008_v50, %v1010_v1  ;;  %v918_v27 = vadd.f32 %v886_v21, %v772_v45 }
 0x142   : > { %v1132_v38 = vrot.slane %v1070_v8, 2  ;;  %v1133_v42 = vrot.slane %v1071_v13, 2  ;;  %v1135_v44 = vrot.slane %v1072_v25, 2  ;;  %v4552_v62 = vunpack.c.h.bf16 %v2816_v59 }
 0x143   : > { %v1042_v63 = vadd.f32 %v1009_v19, %v917_v9  ;;  %v1300_v12 = vmul.f32 %v4288_v4, %v4205_v49  ;;  %v1043_v47 = vadd.f32 %v1011_v11, %v918_v27  ;;  %v1301_v26 = vmul.f32 %v4288_v4, %v4207_v23  ;;  %v2843_v11 = vld [vmem:[%s3254_s29 + $0xcc] sm:$0xe] }
 0x144   : > { %v1134_v52 = vsel %vm846_vm1, %v1132_v38, %v1133_v42  ;;  %v1136_v55 = vsel %vm846_vm1, %v1133_v42, %v1135_v44  ;;  %v4563_v56 = vpop.f32.mrb[0].mxu1  ;;  %v1337_v41 = vmul.f32 %v4299_v28, %v4393_v18  ;;  %v1338_v36 = vmul.f32 %v4299_v28, %v4396_v32 }
 0x145   : > { %v1167_v15 = vadd.f32 %v1134_v52, %v1042_v63  ;;  %v1374_v58 = vmul.f32 %v4411_v39, %v1279_v3  ;;  %v4570_v61 = vpop.f32.mrb[1].mxu1  ;;  %v1168_v60 = vadd.f32 %v1136_v55, %v1043_v47  ;;  %v1375_v57 = vmul.f32 %v4411_v39, %v4552_v62 }
 0x146   : > { %v1411_v54 = vunpack.c.l.bf16 %v4557_v0  ;;  %v1438_v4 = vmul.f32 %v4313_v33, %v4205_v49  ;;  %v4577_v7 = vpop.f32.mrb[2].mxu1  ;;  %v1353_v24 = vadd.f32 %v1337_v41, %v1300_v12  ;;  %v1354_v45 = vadd.f32 %v1338_v36, %v1301_v26 }
 0x147   : > { %v1190_v53 = vadd.f32 %v4425_v43, %v1167_v15  ;;  %v1439_v28 = vmul.f32 %v4313_v33, %v4207_v23  ;;  %v4582_v48 = vpop.f32.mrb[3].mxu1  ;;  %v1191_v51 = vadd.f32 %v4425_v43, %v1168_v60  ;;  %v1440_v39 = vmul.f32 %v4313_v33, %v4224_v5 }
 0x148   : > { %v1500_v22 = vrot.slane %v1438_v4, 1  ;;  %v1563_v49 = vmul.f32 %v4327_v34, %v4393_v18  ;;  %v1390_v50 = vadd.f32 %v1374_v58, %v1353_v24  ;;  %v1391_v1 = vadd.f32 %v1375_v57, %v1354_v45 }
 0x149   : > { %v1206_v16 = vmax.f32 %v1190_v53, 0.0  ;;  %v1501_v37 = vrot.slane %v1439_v28, 1  ;;  %v1207_v8 = vmax.f32 %v1191_v51, 0.0  ;;  %v1503_v13 = vrot.slane %v1440_v39, 1 }
 0x14a   : > { %v1564_v25 = vmul.f32 %v4327_v34, %v4396_v32  ;;  %v1565_v59 = vmul.f32 %v4327_v34, %v4418_v10  ;;  %v1625_v33 = vrot.slane %v1563_v49, 1  ;;  %v1688_v19 = vmul.f32 %v4343_v29, %v1279_v3 }
 0x14b   : > { %v1222_v21 = vmin.f32 %v1206_v16, 6.0  ;;  %v1502_v9 = vsel %vm450_vm0, %v1500_v22, %v1501_v37  ;;  %v1223_v18 = vmin.f32 %v1207_v8, 6.0  ;;  %v1504_v27 = vsel %vm450_vm0, %v1501_v37, %v1503_v13 }
 0x14c   : > { %v1535_v38 = vadd.f32 %v1502_v9, %v1390_v50  ;;  %v1626_v42 = vrot.slane %v1564_v25, 1  ;;  %v1536_v44 = vadd.f32 %v1504_v27, %v1391_v1  ;;  %v1628_v63 = vrot.slane %v1565_v59, 1 }
 0x14d   : > { %v1689_v12 = vmul.f32 %v4343_v29, %v4552_v62  ;;  %v1690_v0 = vmul.f32 %v4343_v29, %v1411_v54  ;;  %v1231_v34 = vpack.c.bf16 %v1223_v18, %v1222_v21  ;;  %v1750_v52 = vrot.slane %v1688_v19, 1 }
 0x14e   : > { %v1627_v47 = vsel %vm450_vm0, %v1625_v33, %v1626_v42  ;;  %v1806_v55 = vunpack.c.l.bf16 %v2843_v11  ;;  %v1629_v3 = vsel %vm450_vm0, %v1626_v42, %v1628_v63  ;;  %v1833_v58 = vmul.f32 %v4360_v2, %v4250_v6 }
 0x14f   : > { %v1660_v26 = vadd.f32 %v1627_v47, %v1535_v38  ;;  %v1751_v15 = vrot.slane %v1689_v12, 1  ;;  %v1753_v41 = vrot.slane %v1690_v0, 1  ;;  %3121 = vmatmul.mubr.bf16.gmra.mrb[12].mxu0 %v1231_v34  ;;  %v1661_v36 = vadd.f32 %v1629_v3, %v1536_v44 }
 0x150   : > { %v1834_v60 = vmul.f32 %v4360_v2, %v4207_v23  ;;  %v1835_v29 = vmul.f32 %v4360_v2, %v4224_v5  ;;  %v1958_v53 = vmul.f32 %v4369_v35, %v1805_v31  ;;  %v1959_v24 = vmul.f32 %v4369_v35, %v4396_v32  ;;  %v4625_v32 = vld [vmem:[%s4703_s4] ss:$0 sm:$0xff] }
 0x151   : > { %v1752_v57 = vsel %vm450_vm0, %v1750_v52, %v1751_v15  ;;  %v1754_v4 = vsel %vm450_vm0, %v1751_v15, %v1753_v41  ;;  %v1895_v6 = vrot.slane %v1833_v58, 2  ;;  %v1960_v23 = vmul.f32 %v4369_v35, %v4418_v10 }
 0x152   : > { %v1785_v45 = vadd.f32 %v1752_v57, %v1660_v26  ;;  %v1786_v28 = vadd.f32 %v1754_v4, %v1661_v36  ;;  %v1896_v51 = vrot.slane %v1834_v60, 2  ;;  %v1898_v39 = vrot.slane %v1835_v29, 2 }
 0x153   : > { %v2020_v5 = vrot.slane %v1958_v53, 2  ;;  %v2021_v2 = vrot.slane %v1959_v24, 2  ;;  %v2083_v49 = vmul.f32 %v4387_v46, %v1806_v55  ;;  %v2084_v14 = vmul.f32 %v4387_v46, %v4552_v62 }
 0x154   : > { %v1897_v22 = vsel %vm846_vm1, %v1895_v6, %v1896_v51  ;;  %v2085_v31 = vmul.f32 %v4387_v46, %v1411_v54  ;;  %v1899_v16 = vsel %vm846_vm1, %v1896_v51, %v1898_v39  ;;  %v2023_v10 = vrot.slane %v1960_v23, 2 }
 0x155   : > { %v1930_v50 = vadd.f32 %v1897_v22, %v1785_v45  ;;  %v2022_v35 = vsel %vm846_vm1, %v2020_v5, %v2021_v2  ;;  %v1931_v1 = vadd.f32 %v1899_v16, %v1786_v28  ;;  %v2145_v37 = vrot.slane %v2083_v49, 2 }
 0x156   : > { %v2146_v8 = vrot.slane %v2084_v14, 2  ;;  %v2148_v13 = vrot.slane %v2085_v31, 2  ;;  %v2024_v25 = vsel %vm846_vm1, %v2021_v2, %v2023_v10  ;;  %v2383_v46 = vadd.f32 %v4491_v30, %v4625_v32 }
 0x157   : > { %v2055_v62 = vadd.f32 %v2022_v35, %v1930_v50  ;;  %v2447_v54 = vadd.f32 %v4563_v56, %v4625_v32  ;;  %v2056_v59 = vadd.f32 %v2024_v25, %v1931_v1  ;;  %v2375_v33 = vadd.f32 %v4625_v32, %v4496_v40 }
 0x158   : > { %v2147_v21 = vsel %vm846_vm1, %v2145_v37, %v2146_v8  ;;  %v2149_v9 = vsel %vm846_vm1, %v2146_v8, %v2148_v13  ;;  %v2503_v11 = vmax.f32 %v2383_v46, 0.0  ;;  %v2439_v18 = vadd.f32 %v4625_v32, %v4570_v61 }
 0x159   : > { %v2180_v19 = vadd.f32 %v2147_v21, %v2055_v62  ;;  %v2181_v27 = vadd.f32 %v2149_v9, %v2056_v59  ;;  %v2519_v38 = vmax.f32 %v2447_v54, 0.0  ;;  %v2386_v30 = vadd.f32 %v4503_v20, %v4625_v32 }
 0x15a   : > { %v2450_v56 = vadd.f32 %v4577_v7, %v4625_v32  ;;  %v2501_v44 = vmax.f32 %v2375_v33, 0.0  ;;  %v2535_v12 = vmin.f32 %v2503_v11, 6.0  ;;  %v2517_v47 = vmax.f32 %v2439_v18, 0.0 }
 0x15b   : > { %v2203_v42 = vadd.f32 %v4425_v43, %v2180_v19  ;;  %v2204_v63 = vadd.f32 %v4425_v43, %v2181_v27  ;;  %v2504_v40 = vmax.f32 %v2386_v30, 0.0  ;;  %v2378_v61 = vadd.f32 %v4625_v32, %v4509_v17 }
 0x15c   : > { %v2520_v0 = vmax.f32 %v2450_v56, 0.0  ;;  %v2442_v20 = vadd.f32 %v4625_v32, %v4582_v48  ;;  %v2551_v55 = vmin.f32 %v2519_v38, 6.0  ;;  %v2533_v48 = vmin.f32 %v2501_v44, 6.0 }
 0x15d   : > { %v2219_v34 = vmax.f32 %v2203_v42, 0.0  ;;  %v2220_v52 = vmax.f32 %v2204_v63, 0.0  ;;  %v2536_v7 = vmin.f32 %v2504_v40, 6.0  ;;  %v2502_v43 = vmax.f32 %v2378_v61, 0.0 }
 0x15e   : > { %v2552_v3 = vmin.f32 %v2520_v0, 6.0  ;;  %v2518_v15 = vmax.f32 %v2442_v20, 0.0  ;;  %v2549_v58 = vmin.f32 %v2517_v47, 6.0 }
 0x15f   : > { %v2235_v26 = vmin.f32 %v2219_v34, 6.0  ;;  %v2236_v17 = vmin.f32 %v2220_v52, 6.0  ;;  %v2972_v41 = vpack.c.bf16 %v2536_v7, %v2535_v12  ;;  %v2534_v60 = vmin.f32 %v2502_v43, 6.0 }
 0x160   : > { %v3012_v36 = vpack.c.bf16 %v2552_v3, %v2551_v55  ;;  %v2550_v29 = vmin.f32 %v2518_v15, 6.0 }
 0x161   : > { %v2244_v57 = vpack.c.bf16 %v2236_v17, %v2235_v26  ;;  %3053 = vst [vmem:[%s4654_s13 + $0x8] sm:$0xff] %v2972_v41   ;;  %v2967_v4 = vpack.c.bf16 %v2534_v60, %v2533_v48 }
 0x162   : > { %3061 = vst [vmem:[%s4654_s13 + $0x48] sm:$0xff] %v3012_v36   ;;  %v3007_v53 = vpack.c.bf16 %v2550_v29, %v2549_v58 }
 0x163   : > { %3137 = vmatmul.mubr.bf16.gmra.mrb[12].mxu1 %v2244_v57  ;;  %2968 = vst [vmem:[%s4654_s13] sm:$0xff] %v2967_v4  }
 0x164   : > { %3060 = vst [vmem:[%s4654_s13 + $0x40] sm:$0xff] %v3007_v53  }
 0x180   : > { %v3114_v24 = vpop.f32.mrb[4].mxu0 }
 0x181   : > { %v2399_v45 = vadd.f32 %v3114_v24, %v4625_v32  ;;  %v2390_v28 = vpop.f32.mrb[5].mxu0 }
 0x182   : > { %v2391_v6 = vadd.f32 %v4625_v32, %v2390_v28  ;;  %v3115_v51 = vpop.f32.mrb[6].mxu0 }
 0x183   : > { %v2507_v39 = vmax.f32 %v2399_v45, 0.0  ;;  %v2402_v23 = vadd.f32 %v3115_v51, %v4625_v32  ;;  %v2393_v5 = vpop.f32.mrb[7].mxu0 }
 0x184   : > { %v2505_v2 = vmax.f32 %v2391_v6, 0.0  ;;  %v2394_v22 = vadd.f32 %v4625_v32, %v2393_v5 }
 0x185   : > { %v2508_v49 = vmax.f32 %v2402_v23, 0.0  ;;  %v2539_v31 = vmin.f32 %v2507_v39, 6.0 }
 0x186   : > { %v2506_v14 = vmax.f32 %v2394_v22, 0.0  ;;  %v2537_v50 = vmin.f32 %v2505_v2, 6.0 }
 0x187   : > { %v2540_v16 = vmin.f32 %v2508_v49, 6.0 }
 0x188   : > { %v2538_v35 = vmin.f32 %v2506_v14, 6.0 }
 0x189   : > { %v2982_v10 = vpack.c.bf16 %v2540_v16, %v2539_v31 }
 0x18a   : > { %v2977_v1 = vpack.c.bf16 %v2538_v35, %v2537_v50 }
 0x18b   : > { %3055 = vst [vmem:[%s4654_s13 + $0x18] sm:$0xff] %v2982_v10  }
 0x18c   : > { %3054 = vst [vmem:[%s4654_s13 + $0x10] sm:$0xff] %v2977_v1  }
 0x194   : > { %v3130_v37 = vpop.f32.mrb[4].mxu1 }
 0x195   : > { %v2463_v8 = vadd.f32 %v3130_v37, %v4625_v32  ;;  %v2454_v13 = vpop.f32.mrb[5].mxu1 }
 0x196   : > { %v2455_v25 = vadd.f32 %v4625_v32, %v2454_v13  ;;  %v3131_v62 = vpop.f32.mrb[6].mxu1 }
 0x197   : > { %v2523_v46 = vmax.f32 %v2463_v8, 0.0  ;;  %v2466_v54 = vadd.f32 %v3131_v62, %v4625_v32  ;;  %v2457_v59 = vpop.f32.mrb[7].mxu1 }
 0x198   : > { %v2521_v21 = vmax.f32 %v2455_v25, 0.0  ;;  %v2458_v9 = vadd.f32 %v4625_v32, %v2457_v59 }
 0x199   : > { %v2524_v33 = vmax.f32 %v2466_v54, 0.0  ;;  %v2555_v11 = vmin.f32 %v2523_v46, 6.0 }
 0x19a   : > { %v2522_v19 = vmax.f32 %v2458_v9, 0.0  ;;  %v2553_v27 = vmin.f32 %v2521_v21, 6.0 }
 0x19b   : > { %v2556_v18 = vmin.f32 %v2524_v33, 6.0 }
 0x19c   : > { %v2554_v38 = vmin.f32 %v2522_v19, 6.0 }
 0x19d   : > { %v3022_v30 = vpack.c.bf16 %v2556_v18, %v2555_v11 }
 0x19e   : > { %v3017_v56 = vpack.c.bf16 %v2554_v38, %v2553_v27 }
 0x19f   : > { %3063 = vst [vmem:[%s4654_s13 + $0x58] sm:$0xff] %v3022_v30  }
 0x1a0   : > { %3062 = vst [vmem:[%s4654_s13 + $0x50] sm:$0xff] %v3017_v56  }
 0x1d1   : > { %v3118_v42 = vpop.f32.mrb[8].mxu0 }
 0x1d2   : > { %v2415_v44 = vadd.f32 %v3118_v42, %v4625_v32  ;;  %v2406_v63 = vpop.f32.mrb[9].mxu0 }
 0x1d3   : > { %v2407_v12 = vadd.f32 %v4625_v32, %v2406_v63  ;;  %v3119_v40 = vpop.f32.mrb[10].mxu0 }
 0x1d4   : > { %v2511_v0 = vmax.f32 %v2415_v44, 0.0  ;;  %v2418_v34 = vadd.f32 %v3119_v40, %v4625_v32  ;;  %v2409_v47 = vpop.f32.mrb[11].mxu0 }
 0x1d5   : > { %v2509_v61 = vmax.f32 %v2407_v12, 0.0  ;;  %v2410_v20 = vadd.f32 %v4625_v32, %v2409_v47 }
 0x1d6   : > { %v2512_v52 = vmax.f32 %v2418_v34, 0.0  ;;  %v2543_v7 = vmin.f32 %v2511_v0, 6.0 }
 0x1d7   : > { %v2510_v55 = vmax.f32 %v2410_v20, 0.0  ;;  %v2541_v26 = vmin.f32 %v2509_v61, 6.0 }
 0x1d8   : > { %v2544_v3 = vmin.f32 %v2512_v52, 6.0 }
 0x1d9   : > { %v2542_v43 = vmin.f32 %v2510_v55, 6.0 }
 0x1da   : > { %v2992_v15 = vpack.c.bf16 %v2544_v3, %v2543_v7 }
 0x1db   : > { %v2987_v17 = vpack.c.bf16 %v2542_v43, %v2541_v26 }
 0x1dc   : > { %3057 = vst [vmem:[%s4654_s13 + $0x28] sm:$0xff] %v2992_v15  }
 0x1dd   : > { %3056 = vst [vmem:[%s4654_s13 + $0x20] sm:$0xff] %v2987_v17  }
 0x1e5   : > { %v3134_v41 = vpop.f32.mrb[8].mxu1 }
 0x1e6   : > { %v2479_v36 = vadd.f32 %v3134_v41, %v4625_v32  ;;  %v2470_v48 = vpop.f32.mrb[9].mxu1 }
 0x1e7   : > { %v2471_v58 = vadd.f32 %v4625_v32, %v2470_v48  ;;  %v3135_v60 = vpop.f32.mrb[10].mxu1 }
 0x1e8   : > { %v2527_v29 = vmax.f32 %v2479_v36, 0.0  ;;  %v2482_v57 = vadd.f32 %v3135_v60, %v4625_v32  ;;  %v2473_v4 = vpop.f32.mrb[11].mxu1 }
 0x1e9   : > { %v2525_v53 = vmax.f32 %v2471_v58, 0.0  ;;  %v2474_v24 = vadd.f32 %v4625_v32, %v2473_v4 }
 0x1ea   : > { %v2528_v45 = vmax.f32 %v2482_v57, 0.0  ;;  %v2559_v6 = vmin.f32 %v2527_v29, 6.0 }
 0x1eb   : > { %v2526_v28 = vmax.f32 %v2474_v24, 0.0  ;;  %v2557_v39 = vmin.f32 %v2525_v53, 6.0 }
 0x1ec   : > { %v2560_v51 = vmin.f32 %v2528_v45, 6.0 }
 0x1ed   : > { %v2558_v23 = vmin.f32 %v2526_v28, 6.0 }
 0x1ee   : > { %v3032_v5 = vpack.c.bf16 %v2560_v51, %v2559_v6 }
 0x1ef   : > { %v3027_v2 = vpack.c.bf16 %v2558_v23, %v2557_v39 }
 0x1f0   : > { %3065 = vst [vmem:[%s4654_s13 + $0x68] sm:$0xff] %v3032_v5  }
 0x1f1   : > { %3064 = vst [vmem:[%s4654_s13 + $0x60] sm:$0xff] %v3027_v2  }
 0x222   : > { %v3122_v22 = vpop.f32.mrb[12].mxu0 }
 0x223   : > { %v2431_v49 = vadd.f32 %v3122_v22, %v4625_v32  ;;  %v2422_v14 = vpop.f32.mrb[13].mxu0 }
 0x224   : > { %v2423_v31 = vadd.f32 %v4625_v32, %v2422_v14  ;;  %v3123_v16 = vpop.f32.mrb[14].mxu0 }
 0x225   : > { %v2515_v50 = vmax.f32 %v2431_v49, 0.0  ;;  %v2434_v35 = vadd.f32 %v3123_v16, %v4625_v32  ;;  %v2425_v10 = vpop.f32.mrb[15].mxu0 }
 0x226   : > { %v2513_v1 = vmax.f32 %v2423_v31, 0.0  ;;  %v2426_v37 = vadd.f32 %v4625_v32, %v2425_v10 }
 0x227   : > { %v2516_v8 = vmax.f32 %v2434_v35, 0.0  ;;  %v2547_v25 = vmin.f32 %v2515_v50, 6.0 }
 0x228   : > { %v2514_v13 = vmax.f32 %v2426_v37, 0.0  ;;  %v2545_v46 = vmin.f32 %v2513_v1, 6.0 }
 0x229   : > { %v2548_v62 = vmin.f32 %v2516_v8, 6.0 }
 0x22a   : > { %v2546_v54 = vmin.f32 %v2514_v13, 6.0 }
 0x22b   : > { %v3002_v59 = vpack.c.bf16 %v2548_v62, %v2547_v25 }
 0x22c   : > { %v2997_v21 = vpack.c.bf16 %v2546_v54, %v2545_v46 }
 0x22d   : > { %3059 = vst [vmem:[%s4654_s13 + $0x38] sm:$0xff] %v3002_v59  }
 0x22e   : > { %3058 = vst [vmem:[%s4654_s13 + $0x30] sm:$0xff] %v2997_v21  }
 0x236   : > { %v3138_v9 = vpop.f32.mrb[12].mxu1 }
 0x237   : > { %v2495_v33 = vadd.f32 %v3138_v9, %v4625_v32  ;;  %v2486_v19 = vpop.f32.mrb[13].mxu1 }
 0x238   : > { %v2487_v11 = vadd.f32 %v4625_v32, %v2486_v19  ;;  %v3139_v18 = vpop.f32.mrb[14].mxu1 }
 0x239   : > { %v2531_v27 = vmax.f32 %v2495_v33, 0.0  ;;  %v2498_v38 = vadd.f32 %v3139_v18, %v4625_v32  ;;  %v2489_v30 = vpop.f32.mrb[15].mxu1 }
 0x23a   : > { %v2529_v56 = vmax.f32 %v2487_v11, 0.0  ;;  %v2490_v42 = vadd.f32 %v4625_v32, %v2489_v30 }
 0x23b   : > { %v2532_v44 = vmax.f32 %v2498_v38, 0.0  ;;  %v2563_v12 = vmin.f32 %v2531_v27, 6.0 }
 0x23c   : > { %v2530_v63 = vmax.f32 %v2490_v42, 0.0  ;;  %v2561_v0 = vmin.f32 %v2529_v56, 6.0 }
 0x23d   : > { %v2564_v40 = vmin.f32 %v2532_v44, 6.0 }
 0x23e   : > { %v2562_v34 = vmin.f32 %v2530_v63, 6.0 }
 0x23f   : > { %v3042_v47 = vpack.c.bf16 %v2564_v40, %v2563_v12 }
 0x240   : > { %v3037_v61 = vpack.c.bf16 %v2562_v34, %v2561_v0 }
 0x241   : > { %3067 = vst [vmem:[%s4654_s13 + $0x78] sm:$0xff] %v3042_v47  }
 0x242   : > { %3066 = vst [vmem:[%s4654_s13 + $0x70] sm:$0xff] %v3037_v61  }
 0x243 PF: > { %s15_s18 = sadd.s32 1, %s3199_s18  }
 0x244   : > { %p12_p4 = scmp.ge.s32.totalorder %s15_s18, 4  }
 0x246   :  { %14 = sbr.rel (!%p12_p4) target bundleno = 1 (0x1), region = 71 }

</bundles_post_ra>
